<compile_context>
chip_gen: v7x
topology: tpu7x:2x2x1
jax: 0.10.0
libtpu: 0.0.40
codegen_flags: <defaults>
</compile_context>

<pallas_src>
import functools
import math

import numpy as np
import jax
import jax.numpy as jnp
from jax import lax
from jax.experimental import pallas as pl
from jax.experimental.pallas import tpu as pltpu


def _layer_norm(x, g, b, eps=1e-5):
    mu = jnp.mean(x, axis=-1, keepdims=True)
    var = jnp.mean((x - mu) ** 2, axis=-1, keepdims=True)
    return (x - mu) * lax.rsqrt(var + eps) * g + b


def _encoder_kernel(S, D, H, TB,
                    x_ref, wqkv_ref, wout_ref, vecs_ref, cbias_ref,
                    o_ref):
    hd = D // H

    x = x_ref[...].astype(jnp.float32)               # (TB*S, D) row-slab

    # --- consolidated small vectors (f32): [g1, be1, g2, be2, bo, b1, b2] ---
    g1, be1 = vecs_ref[0:1, :], vecs_ref[1:2, :]
    g2, be2 = vecs_ref[2:3, :], vecs_ref[3:4, :]
    bo, b1, b2 = vecs_ref[4:5, :], vecs_ref[5:6, :], vecs_ref[6:7, :]

    # --- packed weights (param dtype, e.g. bf16) ---
    wqkv = wqkv_ref[0:D, :]                          # (D, 3D)   [Wq*scale | Wk | Wv]
    bqkv = wqkv_ref[D:D + 1, :].astype(jnp.float32)  # (1, 3D)   fused bias row
    wo = wout_ref[0 * D:1 * D, :]                    # (D, D)
    w1 = wout_ref[1 * D:2 * D, :]
    w2 = wout_ref[2 * D:3 * D, :]

    # --- LayerNorm1 (f32) ---
    xln = _layer_norm(x, g1, be1)

    # --- fused QKV projection: one MXU push, bf16 operands, f32 accumulation.
    #     1/sqrt(hd) is already folded into the Q columns/bias (wrapper). ---
    qkv = jnp.dot(xln.astype(wqkv.dtype), wqkv,
                  preferred_element_type=jnp.float32) + bqkv      # (rows, 3D) f32
    qkv = qkv.reshape(TB, S, 3 * D)                  # major-dim split, no relayout

    # --- additive causal bias: precomputed resident input, hoisted broadcast ---
    bias = jnp.broadcast_to(cbias_ref[...][None], (TB, S, S))     # (TB, S, S)

    # --- attention: per-head context folded straight into the output
    #     projection (no lane concat, no separate full (rows,D)x(D,D) matmul).
    #     Diagonal of the causal mask is always unmasked, so -1e30 + max-sub
    #     is safe. ---
    m = xln + bo                                     # residual uses post-LN1 x
    for h in range(H):                               # static loop, H = 4
        qh = qkv[:, :, 0 * D + h * hd:0 * D + (h + 1) * hd]       # (TB, S, hd)
        kh = qkv[:, :, 1 * D + h * hd:1 * D + (h + 1) * hd]
        vh = qkv[:, :, 2 * D + h * hd:2 * D + (h + 1) * hd]
        s = jnp.einsum('bqd,bkd->bqk', qh, kh,
                       preferred_element_type=jnp.float32) + bias  # (TB, S, S)
        s = s - jnp.max(s, axis=-1, keepdims=True)
        p = jnp.exp(s)
        p = p * pl.reciprocal(jnp.sum(p, axis=-1, keepdims=True), approx=True)
        oh = jnp.einsum('bqk,bkd->bqd', p, vh,
                        preferred_element_type=jnp.float32)        # (TB, S, hd)
        # head output folded into the output projection: Wo row-slice is an
        # aligned sublane slice (cheap), accumulation stays f32.
        m = m + jnp.dot(oh.reshape(TB * S, hd).astype(wo.dtype),
                        wo[h * hd:(h + 1) * hd, :],
                        preferred_element_type=jnp.float32)

    # --- LayerNorm2 + FFN + skip (post-LN2 skip, as in PyTorch) ---
    mln = _layer_norm(m, g2, be2)
    h1 = jnp.maximum(
        jnp.dot(mln.astype(w1.dtype), w1, preferred_element_type=jnp.float32) + b1,
        0.0)
    h2 = jnp.dot(h1.astype(w2.dtype), w2, preferred_element_type=jnp.float32) + b2
    o_ref[...] = (h2 + mln).astype(o_ref.dtype)


def _pick_batch_block(B, S):
    """Batches per grid step.

    Default: the whole batch in one step (grid=(1,)) -- at small sizes the
    fixed per-step pipeline overhead dominates and splitting shrinks M.
    Only split (exposing a 'parallel' axis for v7x megacore) when every step
    still has >= 256 rows feeding the MXU.
    """
    MIN_ROWS = 256
    if B * S >= 2 * MIN_ROWS:
        tb = max(1, MIN_ROWS // S)
        if tb < B and (tb * S) % 8 == 0:   # keep the row-block sublane aligned
            return tb
    return B


def encoder_block_pallas(x, heads, tensors, *, param_dtype=jnp.bfloat16,
                         batch_block=None):
    """x: (B, S, D) fused embeddings; tensors: flat tuple of block params.

    param_dtype: storage/operand dtype for x and the weight slabs (bf16 by
    default per the v6e/v7x review; pass jnp.float32 for exact module math).
    LayerNorm, softmax and matmul accumulation are always f32.
    """
    (g1, be1, wq, wk, wv, bq, bk, bv, wo, bo, g2, be2, w1, b1, w2, b2) = tensors
    B, S, D = x.shape
    assert D % heads == 0
    hd = D // heads
    scale = 1.0 / math.sqrt(hd)

    # ---- wrapper-side packing (free; in a real model pre-pack once) ----
    # Fused QKV weight with 1/sqrt(hd) folded into the Q columns, plus the
    # fused QKV bias as one extra row -> a single resident operand.
    wqkv_aug = jnp.concatenate(
        [jnp.concatenate([wq * scale, wk, wv], axis=1),
         jnp.concatenate([bq * scale, bk, bv], axis=1)],
        axis=0).astype(param_dtype)                                # (D+1, 3D)
    # Wo ; W1 ; W2 stacked along rows -> aligned sublane slices in-kernel.
    wout = jnp.concatenate([wo, w1, w2], axis=0).astype(param_dtype)  # (3D, D)
    # Seven (1, D) vectors consolidated into one f32 slab (LN params kept f32).
    vecs = jnp.concatenate([g1, be1, g2, be2, bo, b1, b2],
                           axis=0).astype(jnp.float32)             # (7, D)
    # Additive causal bias built once outside the kernel.
    row = lax.broadcasted_iota(jnp.int32, (S, S), 0)
    col = lax.broadcasted_iota(jnp.int32, (S, S), 1)
    cbias = jnp.where(col > row, -1e30, 0.0).astype(jnp.float32)   # (S, S)

    # ---- batch blocking (grid collapses to 1 step at small sizes) ----
    tb = batch_block if batch_block is not None else _pick_batch_block(B, S)
    tb = max(1, min(tb, B))
    n_blk = pl.cdiv(B, tb)
    Bp = n_blk * tb
    xp = x
    if Bp != B:
        # Zero padding: padded rows see var=0 in LayerNorm (eps keeps it
        # finite) and are discarded after the call.
        xp = jnp.concatenate([x, jnp.zeros((Bp - B, S, D), x.dtype)], axis=0)
    xf = xp.reshape(Bp * S, D).astype(param_dtype)
    rows = tb * S

    kernel = functools.partial(_encoder_kernel, S, D, heads, tb)

    def full(shape):
        return pl.BlockSpec(shape, lambda i: (0, 0))   # fully-resident operand

    # NOTE (v7x / large dim_model): at D = 32 the resident weights are ~13 KiB
    # in bf16.  If dim_model scales (e.g. D ~ 2048), block the QKV/FFN matmuls
    # over K/N with pl.Buffered(2) block specs and set
    # pltpu.CompilerParams(vmem_limit_bytes=...) so the design still fits
    # v7x's 64 MiB VMEM.
    out = pl.pallas_call(
        kernel,
        out_shape=jax.ShapeDtypeStruct((Bp * S, D), jnp.float32),
        grid_spec=pltpu.PrefetchScalarGridSpec(
            num_scalar_prefetch=0,
            grid=(n_blk,),
            in_specs=[
                pl.BlockSpec((rows, D), lambda i: (i, 0)),   # x: TB batches/step
                full((D + 1, 3 * D)),                        # [Wq*s|Wk|Wv ; bqkv]
                full((3 * D, D)),                            # [Wo ; W1 ; W2]
                full((7, D)),                                # g1,be1,g2,be2,bo,b1,b2
                full((S, S)),                                # causal additive bias
            ],
            out_specs=pl.BlockSpec((rows, D), lambda i: (i, 0)),
        ),
        compiler_params=pltpu.CompilerParams(
            dimension_semantics=("parallel",)),
    )(xf, wqkv_aug, wout, vecs, cbias)

    return out.reshape(Bp, S, D)[:B]


def reference_encoder(x, heads, tensors):
    """Pure-JAX f32 reference of the same math (post-embedding part)."""
    (g1, be1, wq, wk, wv, bq, bk, bv, wo, bo, g2, be2, w1, b1, w2, b2) = tensors
    B, S, D = x.shape
    hd = D // heads

    def ln(y, g, b):
        mu = y.mean(-1, keepdims=True)
        var = ((y - mu) ** 2).mean(-1, keepdims=True)
        return (y - mu) / jnp.sqrt(var + 1e-5) * g + b

    xln = ln(x, g1, be1)
    q = xln @ wq + bq
    k = xln @ wk + bk
    v = xln @ wv + bv
    qh = q.reshape(B, S, heads, hd).transpose(0, 2, 1, 3)
    kh = k.reshape(B, S, heads, hd).transpose(0, 2, 1, 3)
    vh = v.reshape(B, S, heads, hd).transpose(0, 2, 1, 3)
    s = jnp.einsum('bhqd,bhkd->bhqk', qh, kh) / math.sqrt(hd)
    causal = jnp.triu(jnp.ones((S, S), bool), k=1)
    s = jnp.where(causal, -1e30, s)
    s = s - s.max(-1, keepdims=True)
    p = jnp.exp(s)
    p = p / p.sum(-1, keepdims=True)
    o = jnp.einsum('bhqk,bhkd->bhqd', p, vh).transpose(0, 2, 1, 3).reshape(B, S, D)
    m = o @ wo + bo + xln
    mln = ln(m, g2, be2)
    h1 = jnp.maximum(mln @ w1 + b1, 0.0)
    return h1 @ w2 + b2 + mln


if __name__ == "__main__":
    # Module hyper-params (small, consistent with the forward pass)
    B = 8                  # whole batch fits one grid step (grid=(1,))
    SEQ_LEN = 9            # constructor `seq_len`; used sequence length = seq_len - 1
    S = SEQ_LEN - 1
    D = 32                 # dim_model
    H = 4                  # heads_en
    T = 4                  # number of tags per position (in_tg last axis)
    total_ex, total_cat, total_tg = 10, 5, 3
    f32 = jnp.float32

    key = jax.random.PRNGKey(0)
    ks = jax.random.split(key, 26)

    # --- deterministic parameter init (Linear/attn weights stored as (in, out),
    # i.e. already transposed relative to PyTorch's (out, in)) ---
    embd_ex = 0.1 * jax.random.normal(ks[0], (total_ex, D), f32)
    embd_cat = 0.1 * jax.random.normal(ks[1], (total_cat + 1, D), f32)
    embd_tg = 0.1 * jax.random.normal(ks[2], (total_tg + 1, D), f32)
    embd_pos = 0.1 * jax.random.normal(ks[3], (SEQ_LEN, D), f32)
    dt_w = 0.1 * jax.random.normal(ks[4], (1, D), f32)     # dt_fc.weight^T, no bias

    gamma1 = jnp.ones((1, D), f32)
    beta1 = jnp.zeros((1, D), f32)
    wq = 0.1 * jax.random.normal(ks[5], (D, D), f32)
    wk = 0.1 * jax.random.normal(ks[6], (D, D), f32)
    wv = 0.1 * jax.random.normal(ks[7], (D, D), f32)
    bq = 0.02 * jax.random.normal(ks[8], (1, D), f32)
    bk = 0.02 * jax.random.normal(ks[9], (1, D), f32)
    bv = 0.02 * jax.random.normal(ks[10], (1, D), f32)
    wo = 0.1 * jax.random.normal(ks[11], (D, D), f32)
    bo = 0.02 * jax.random.normal(ks[12], (1, D), f32)
    gamma2 = jnp.ones((1, D), f32)
    beta2 = jnp.zeros((1, D), f32)
    w1 = 0.1 * jax.random.normal(ks[13], (D, D), f32)
    b1 = 0.02 * jax.random.normal(ks[14], (1, D), f32)
    w2 = 0.1 * jax.random.normal(ks[15], (D, D), f32)
    b2 = 0.02 * jax.random.normal(ks[16], (1, D), f32)

    tensors = (gamma1, beta1, wq, wk, wv, bq, bk, bv, wo, bo,
               gamma2, beta2, w1, b1, w2, b2)

    # --- example inputs (first_block=True path) ---
    in_ex = jax.random.randint(ks[20], (B, S), 0, total_ex)
    in_cat = jax.random.randint(ks[21], (B, S), 0, total_cat + 1)
    in_tg = jax.random.randint(ks[22], (B, S, T), 0, total_tg + 1)
    in_dt = jax.random.uniform(ks[23], (B, S), f32)

    # --- plain-JAX glue: embedding gathers + dt projection + tag pooling + pos ---
    ex_e = embd_ex[in_ex]                    # (B, S, D)
    cat_e = embd_cat[in_cat]                 # (B, S, D)
    dt_e = in_dt[..., None] * dt_w           # Linear(1, D, bias=False): (B, S, D)
    tg_e = embd_tg[in_tg]                    # (B, S, T, D)
    x = ex_e + cat_e + dt_e + tg_e.mean(axis=2) + tg_e.max(axis=2)
    x = x + embd_pos[jnp.arange(S)][None]    # positional embedding (first S rows)

    # --- Pallas kernel: default bf16 operands (v6e/v7x) and exact-f32 mode ---
    out_bf16 = encoder_block_pallas(x, H, tensors)                       # bf16 params
    out_f32 = encoder_block_pallas(x, H, tensors, param_dtype=jnp.float32)
    jax.block_until_ready((out_bf16, out_f32))

    # exact-precision mode vs pure-f32 reference (only the EUP approximate
    # reciprocal in the softmax denominator differs).
    ref = reference_encoder(x, H, tensors)
    np.testing.assert_allclose(np.asarray(out_f32), np.asarray(ref),
                               rtol=5e-3, atol=5e-3)

    # bf16 mode vs a reference fed the same bf16-quantized x/weights, so the
    # comparison isolates kernel-internal error (operand casts for the MXU +
    # approx reciprocal); tolerance loosened accordingly.
    def qd(a):
        return a.astype(jnp.bfloat16).astype(jnp.float32)

    tensors_q = (gamma1, beta1, qd(wq), qd(wk), qd(wv), qd(bq), qd(bk), qd(bv),
                 qd(wo), qd(bo), gamma2, beta2, qd(w1), qd(b1), qd(w2), qd(b2))
    ref_q = reference_encoder(qd(x), H, tensors_q)
    np.testing.assert_allclose(np.asarray(out_bf16), np.asarray(ref_q),
                               rtol=2e-2, atol=2e-2)

    print("KERNEL_OK")
</pallas_src>

<mosaic_0001>
module attributes {stable_mosaic.version = 11 : i64} {
  func.func @_encoder_kernel(%arg0: i32, %arg1: memref<64x32xbf16, #tpu.memory_space<vmem>>, %arg2: memref<33x96xbf16, #tpu.memory_space<vmem>>, %arg3: memref<96x32xbf16, #tpu.memory_space<vmem>>, %arg4: memref<7x32xf32, #tpu.memory_space<vmem>>, %arg5: memref<8x8xf32, #tpu.memory_space<vmem>>, %arg6: memref<64x32xf32, #tpu.memory_space<vmem>>) attributes {dimension_semantics = [#tpu.dimension_semantics<parallel>], iteration_bounds = array<i64: 1>, scalar_prefetch = 0 : i64, scratch_operands = 0 : i64, tpu.core_type = #tpu.core_type<tc>, window_params = [{transform_indices = @transform_0, window_bounds = array<i64: 64, 32>}, {pipeline_mode = #tpu.pipeline_mode<synchronous>, transform_indices = @transform_1, window_bounds = array<i64: 33, 96>}, {pipeline_mode = #tpu.pipeline_mode<synchronous>, transform_indices = @transform_2, window_bounds = array<i64: 96, 32>}, {pipeline_mode = #tpu.pipeline_mode<synchronous>, transform_indices = @transform_3, window_bounds = array<i64: 7, 32>}, {pipeline_mode = #tpu.pipeline_mode<synchronous>, transform_indices = @transform_4, window_bounds = array<i64: 8, 8>}, {transform_indices = @transform_5, window_bounds = array<i64: 64, 32>}]} {
    %c0 = arith.constant 0 : index
    %c0_0 = arith.constant 0 : index
    %0 = vector.load %arg1[%c0, %c0_0] : memref<64x32xbf16, #tpu.memory_space<vmem>>, vector<64x32xbf16>
    %1 = arith.extf %0 : vector<64x32xbf16> to vector<64x32xf32>
    %c0_1 = arith.constant 0 : index
    %c0_2 = arith.constant 0 : index
    %2 = vector.load %arg4[%c0_1, %c0_2] : memref<7x32xf32, #tpu.memory_space<vmem>>, vector<1x32xf32>
    %c1 = arith.constant 1 : index
    %c0_3 = arith.constant 0 : index
    %3 = vector.load %arg4[%c1, %c0_3] : memref<7x32xf32, #tpu.memory_space<vmem>>, vector<1x32xf32>
    %c2 = arith.constant 2 : index
    %c0_4 = arith.constant 0 : index
    %4 = vector.load %arg4[%c2, %c0_4] : memref<7x32xf32, #tpu.memory_space<vmem>>, vector<1x32xf32>
    %c3 = arith.constant 3 : index
    %c0_5 = arith.constant 0 : index
    %5 = vector.load %arg4[%c3, %c0_5] : memref<7x32xf32, #tpu.memory_space<vmem>>, vector<1x32xf32>
    %c4 = arith.constant 4 : index
    %c0_6 = arith.constant 0 : index
    %6 = vector.load %arg4[%c4, %c0_6] : memref<7x32xf32, #tpu.memory_space<vmem>>, vector<1x32xf32>
    %c5 = arith.constant 5 : index
    %c0_7 = arith.constant 0 : index
    %7 = vector.load %arg4[%c5, %c0_7] : memref<7x32xf32, #tpu.memory_space<vmem>>, vector<1x32xf32>
    %c6 = arith.constant 6 : index
    %c0_8 = arith.constant 0 : index
    %8 = vector.load %arg4[%c6, %c0_8] : memref<7x32xf32, #tpu.memory_space<vmem>>, vector<1x32xf32>
    %c0_9 = arith.constant 0 : index
    %c0_10 = arith.constant 0 : index
    %9 = vector.load %arg2[%c0_9, %c0_10] : memref<33x96xbf16, #tpu.memory_space<vmem>>, vector<32x96xbf16>
    %c32 = arith.constant 32 : index
    %c0_11 = arith.constant 0 : index
    %10 = vector.load %arg2[%c32, %c0_11] : memref<33x96xbf16, #tpu.memory_space<vmem>>, vector<1x96xbf16>
    %11 = arith.extf %10 : vector<1x96xbf16> to vector<1x96xf32>
    %c0_12 = arith.constant 0 : index
    %c0_13 = arith.constant 0 : index
    %12 = vector.load %arg3[%c0_12, %c0_13] : memref<96x32xbf16, #tpu.memory_space<vmem>>, vector<32x32xbf16>
    %c32_14 = arith.constant 32 : index
    %c0_15 = arith.constant 0 : index
    %13 = vector.load %arg3[%c32_14, %c0_15] : memref<96x32xbf16, #tpu.memory_space<vmem>>, vector<32x32xbf16>
    %c64 = arith.constant 64 : index
    %c0_16 = arith.constant 0 : index
    %14 = vector.load %arg3[%c64, %c0_16] : memref<96x32xbf16, #tpu.memory_space<vmem>>, vector<32x32xbf16>
    %cst = arith.constant dense<0.000000e+00> : vector<64xf32>
    %15 = vector.multi_reduction <add>, %1, %cst [1] : vector<64x32xf32> to vector<64xf32>
    %16 = vector.shape_cast %15 : vector<64xf32> to vector<64x1xf32>
    %cst_17 = arith.constant 3.200000e+01 : f32
    %17 = vector.broadcast %cst_17 : f32 to vector<64x1xf32>
    %18 = arith.divf %16, %17 : vector<64x1xf32>
    %19 = vector.broadcast %18 : vector<64x1xf32> to vector<64x32xf32>
    %20 = arith.subf %1, %19 : vector<64x32xf32>
    %21 = arith.mulf %20, %20 : vector<64x32xf32>
    %cst_18 = arith.constant dense<0.000000e+00> : vector<64xf32>
    %22 = vector.multi_reduction <add>, %21, %cst_18 [1] : vector<64x32xf32> to vector<64xf32>
    %23 = vector.shape_cast %22 : vector<64xf32> to vector<64x1xf32>
    %cst_19 = arith.constant 3.200000e+01 : f32
    %24 = vector.broadcast %cst_19 : f32 to vector<64x1xf32>
    %25 = arith.divf %23, %24 : vector<64x1xf32>
    %26 = vector.broadcast %18 : vector<64x1xf32> to vector<64x32xf32>
    %27 = arith.subf %1, %26 : vector<64x32xf32>
    %cst_20 = arith.constant 9.99999974E-6 : f32
    %28 = vector.broadcast %cst_20 : f32 to vector<64x1xf32>
    %29 = arith.addf %25, %28 : vector<64x1xf32>
    %30 = math.rsqrt %29 : vector<64x1xf32>
    %31 = vector.broadcast %30 : vector<64x1xf32> to vector<64x32xf32>
    %32 = arith.mulf %27, %31 : vector<64x32xf32>
    %33 = vector.broadcast %2 : vector<1x32xf32> to vector<64x32xf32>
    %34 = arith.mulf %32, %33 : vector<64x32xf32>
    %35 = vector.broadcast %3 : vector<1x32xf32> to vector<64x32xf32>
    %36 = arith.addf %34, %35 : vector<64x32xf32>
    %37 = arith.truncf %36 : vector<64x32xf32> to vector<64x32xbf16>
    %cst_21 = arith.constant dense<0.000000e+00> : vector<64x96xf32>
    %38 = tpu.matmul %37, %9, %cst_21 {dimension_numbers = #tpu.dot_dimension_numbers<[1], [0], [0], [1], [0, 0, 1, 1], [], []>} : vector<64x32xbf16>, vector<32x96xbf16>, vector<64x96xf32> -> vector<64x96xf32>
    %39 = vector.broadcast %11 : vector<1x96xf32> to vector<64x96xf32>
    %40 = arith.addf %38, %39 : vector<64x96xf32>
    %41 = vector.shape_cast %40 : vector<64x96xf32> to vector<8x8x96xf32>
    %c0_22 = arith.constant 0 : index
    %c0_23 = arith.constant 0 : index
    %42 = vector.load %arg5[%c0_22, %c0_23] : memref<8x8xf32, #tpu.memory_space<vmem>>, vector<8x8xf32>
    %43 = vector.shape_cast %42 : vector<8x8xf32> to vector<1x8x8xf32>
    %44 = vector.shape_cast %43 : vector<1x8x8xf32> to vector<1x8x8xf32>
    %45 = vector.broadcast %44 : vector<1x8x8xf32> to vector<8x8x8xf32>
    %46 = vector.broadcast %6 : vector<1x32xf32> to vector<64x32xf32>
    %47 = arith.addf %36, %46 : vector<64x32xf32>
    %48 = vector.extract_strided_slice %41 {offsets = [0, 0, 0], sizes = [8, 8, 8], strides = [1, 1, 1]} : vector<8x8x96xf32> to vector<8x8x8xf32>
    %49 = vector.extract_strided_slice %41 {offsets = [0, 0, 32], sizes = [8, 8, 8], strides = [1, 1, 1]} : vector<8x8x96xf32> to vector<8x8x8xf32>
    %50 = vector.extract_strided_slice %41 {offsets = [0, 0, 64], sizes = [8, 8, 8], strides = [1, 1, 1]} : vector<8x8x96xf32> to vector<8x8x8xf32>
    "tpu.trace_start"() <{level = 10 : i32, message = "bqd,bkd->bqk"}> : () -> ()
    %cst_24 = arith.constant dense<0.000000e+00> : vector<8x8x8xf32>
    %51 = tpu.matmul %48, %49, %cst_24 {dimension_numbers = #tpu.dot_dimension_numbers<[2], [2], [1], [1], [0, 0, 0, 1, 1, 1], [0], [0]>} : vector<8x8x8xf32>, vector<8x8x8xf32>, vector<8x8x8xf32> -> vector<8x8x8xf32>
    "tpu.trace_stop"() : () -> ()
    %52 = arith.addf %51, %45 : vector<8x8x8xf32>
    %cst_25 = arith.constant dense<0xFF800000> : vector<8x8xf32>
    %53 = vector.multi_reduction <maximumf>, %52, %cst_25 [2] : vector<8x8x8xf32> to vector<8x8xf32>
    %54 = vector.shape_cast %53 : vector<8x8xf32> to vector<8x8x1xf32>
    %55 = vector.broadcast %54 : vector<8x8x1xf32> to vector<8x8x8xf32>
    %56 = arith.subf %52, %55 : vector<8x8x8xf32>
    %57 = math.exp %56 : vector<8x8x8xf32>
    %cst_26 = arith.constant dense<0.000000e+00> : vector<8x8xf32>
    %58 = vector.multi_reduction <add>, %57, %cst_26 [2] : vector<8x8x8xf32> to vector<8x8xf32>
    %59 = vector.shape_cast %58 : vector<8x8xf32> to vector<8x8x1xf32>
    %60 = tpu.reciprocal %59 {approx = true} : vector<8x8x1xf32> -> vector<8x8x1xf32>
    %61 = vector.broadcast %60 : vector<8x8x1xf32> to vector<8x8x8xf32>
    %62 = arith.mulf %57, %61 : vector<8x8x8xf32>
    "tpu.trace_start"() <{level = 10 : i32, message = "bqk,bkd->bqd"}> : () -> ()
    %cst_27 = arith.constant dense<0.000000e+00> : vector<8x8x8xf32>
    %63 = tpu.matmul %62, %50, %cst_27 {dimension_numbers = #tpu.dot_dimension_numbers<[2], [1], [1], [2], [0, 0, 0, 1, 1, 2], [0], [0]>} : vector<8x8x8xf32>, vector<8x8x8xf32>, vector<8x8x8xf32> -> vector<8x8x8xf32>
    "tpu.trace_stop"() : () -> ()
    %64 = vector.shape_cast %63 : vector<8x8x8xf32> to vector<64x8xf32>
    %65 = arith.truncf %64 : vector<64x8xf32> to vector<64x8xbf16>
    %66 = vector.extract_strided_slice %12 {offsets = [0, 0], sizes = [8, 32], strides = [1, 1]} : vector<32x32xbf16> to vector<8x32xbf16>
    %cst_28 = arith.constant dense<0.000000e+00> : vector<64x32xf32>
    %67 = tpu.matmul %65, %66, %cst_28 {dimension_numbers = #tpu.dot_dimension_numbers<[1], [0], [0], [1], [0, 0, 1, 1], [], []>} : vector<64x8xbf16>, vector<8x32xbf16>, vector<64x32xf32> -> vector<64x32xf32>
    %68 = arith.addf %47, %67 : vector<64x32xf32>
    %69 = vector.extract_strided_slice %41 {offsets = [0, 0, 8], sizes = [8, 8, 8], strides = [1, 1, 1]} : vector<8x8x96xf32> to vector<8x8x8xf32>
    %70 = vector.extract_strided_slice %41 {offsets = [0, 0, 40], sizes = [8, 8, 8], strides = [1, 1, 1]} : vector<8x8x96xf32> to vector<8x8x8xf32>
    %71 = vector.extract_strided_slice %41 {offsets = [0, 0, 72], sizes = [8, 8, 8], strides = [1, 1, 1]} : vector<8x8x96xf32> to vector<8x8x8xf32>
    "tpu.trace_start"() <{level = 10 : i32, message = "bqd,bkd->bqk"}> : () -> ()
    %cst_29 = arith.constant dense<0.000000e+00> : vector<8x8x8xf32>
    %72 = tpu.matmul %69, %70, %cst_29 {dimension_numbers = #tpu.dot_dimension_numbers<[2], [2], [1], [1], [0, 0, 0, 1, 1, 1], [0], [0]>} : vector<8x8x8xf32>, vector<8x8x8xf32>, vector<8x8x8xf32> -> vector<8x8x8xf32>
    "tpu.trace_stop"() : () -> ()
    %73 = arith.addf %72, %45 : vector<8x8x8xf32>
    %cst_30 = arith.constant dense<0xFF800000> : vector<8x8xf32>
    %74 = vector.multi_reduction <maximumf>, %73, %cst_30 [2] : vector<8x8x8xf32> to vector<8x8xf32>
    %75 = vector.shape_cast %74 : vector<8x8xf32> to vector<8x8x1xf32>
    %76 = vector.broadcast %75 : vector<8x8x1xf32> to vector<8x8x8xf32>
    %77 = arith.subf %73, %76 : vector<8x8x8xf32>
    %78 = math.exp %77 : vector<8x8x8xf32>
    %cst_31 = arith.constant dense<0.000000e+00> : vector<8x8xf32>
    %79 = vector.multi_reduction <add>, %78, %cst_31 [2] : vector<8x8x8xf32> to vector<8x8xf32>
    %80 = vector.shape_cast %79 : vector<8x8xf32> to vector<8x8x1xf32>
    %81 = tpu.reciprocal %80 {approx = true} : vector<8x8x1xf32> -> vector<8x8x1xf32>
    %82 = vector.broadcast %81 : vector<8x8x1xf32> to vector<8x8x8xf32>
    %83 = arith.mulf %78, %82 : vector<8x8x8xf32>
    "tpu.trace_start"() <{level = 10 : i32, message = "bqk,bkd->bqd"}> : () -> ()
    %cst_32 = arith.constant dense<0.000000e+00> : vector<8x8x8xf32>
    %84 = tpu.matmul %83, %71, %cst_32 {dimension_numbers = #tpu.dot_dimension_numbers<[2], [1], [1], [2], [0, 0, 0, 1, 1, 2], [0], [0]>} : vector<8x8x8xf32>, vector<8x8x8xf32>, vector<8x8x8xf32> -> vector<8x8x8xf32>
    "tpu.trace_stop"() : () -> ()
    %85 = vector.shape_cast %84 : vector<8x8x8xf32> to vector<64x8xf32>
    %86 = arith.truncf %85 : vector<64x8xf32> to vector<64x8xbf16>
    %87 = vector.extract_strided_slice %12 {offsets = [8, 0], sizes = [8, 32], strides = [1, 1]} : vector<32x32xbf16> to vector<8x32xbf16>
    %cst_33 = arith.constant dense<0.000000e+00> : vector<64x32xf32>
    %88 = tpu.matmul %86, %87, %cst_33 {dimension_numbers = #tpu.dot_dimension_numbers<[1], [0], [0], [1], [0, 0, 1, 1], [], []>} : vector<64x8xbf16>, vector<8x32xbf16>, vector<64x32xf32> -> vector<64x32xf32>
    %89 = arith.addf %68, %88 : vector<64x32xf32>
    %90 = vector.extract_strided_slice %41 {offsets = [0, 0, 16], sizes = [8, 8, 8], strides = [1, 1, 1]} : vector<8x8x96xf32> to vector<8x8x8xf32>
    %91 = vector.extract_strided_slice %41 {offsets = [0, 0, 48], sizes = [8, 8, 8], strides = [1, 1, 1]} : vector<8x8x96xf32> to vector<8x8x8xf32>
    %92 = vector.extract_strided_slice %41 {offsets = [0, 0, 80], sizes = [8, 8, 8], strides = [1, 1, 1]} : vector<8x8x96xf32> to vector<8x8x8xf32>
    "tpu.trace_start"() <{level = 10 : i32, message = "bqd,bkd->bqk"}> : () -> ()
    %cst_34 = arith.constant dense<0.000000e+00> : vector<8x8x8xf32>
    %93 = tpu.matmul %90, %91, %cst_34 {dimension_numbers = #tpu.dot_dimension_numbers<[2], [2], [1], [1], [0, 0, 0, 1, 1, 1], [0], [0]>} : vector<8x8x8xf32>, vector<8x8x8xf32>, vector<8x8x8xf32> -> vector<8x8x8xf32>
    "tpu.trace_stop"() : () -> ()
    %94 = arith.addf %93, %45 : vector<8x8x8xf32>
    %cst_35 = arith.constant dense<0xFF800000> : vector<8x8xf32>
    %95 = vector.multi_reduction <maximumf>, %94, %cst_35 [2] : vector<8x8x8xf32> to vector<8x8xf32>
    %96 = vector.shape_cast %95 : vector<8x8xf32> to vector<8x8x1xf32>
    %97 = vector.broadcast %96 : vector<8x8x1xf32> to vector<8x8x8xf32>
    %98 = arith.subf %94, %97 : vector<8x8x8xf32>
    %99 = math.exp %98 : vector<8x8x8xf32>
    %cst_36 = arith.constant dense<0.000000e+00> : vector<8x8xf32>
    %100 = vector.multi_reduction <add>, %99, %cst_36 [2] : vector<8x8x8xf32> to vector<8x8xf32>
    %101 = vector.shape_cast %100 : vector<8x8xf32> to vector<8x8x1xf32>
    %102 = tpu.reciprocal %101 {approx = true} : vector<8x8x1xf32> -> vector<8x8x1xf32>
    %103 = vector.broadcast %102 : vector<8x8x1xf32> to vector<8x8x8xf32>
    %104 = arith.mulf %99, %103 : vector<8x8x8xf32>
    "tpu.trace_start"() <{level = 10 : i32, message = "bqk,bkd->bqd"}> : () -> ()
    %cst_37 = arith.constant dense<0.000000e+00> : vector<8x8x8xf32>
    %105 = tpu.matmul %104, %92, %cst_37 {dimension_numbers = #tpu.dot_dimension_numbers<[2], [1], [1], [2], [0, 0, 0, 1, 1, 2], [0], [0]>} : vector<8x8x8xf32>, vector<8x8x8xf32>, vector<8x8x8xf32> -> vector<8x8x8xf32>
    "tpu.trace_stop"() : () -> ()
    %106 = vector.shape_cast %105 : vector<8x8x8xf32> to vector<64x8xf32>
    %107 = arith.truncf %106 : vector<64x8xf32> to vector<64x8xbf16>
    %108 = vector.extract_strided_slice %12 {offsets = [16, 0], sizes = [8, 32], strides = [1, 1]} : vector<32x32xbf16> to vector<8x32xbf16>
    %cst_38 = arith.constant dense<0.000000e+00> : vector<64x32xf32>
    %109 = tpu.matmul %107, %108, %cst_38 {dimension_numbers = #tpu.dot_dimension_numbers<[1], [0], [0], [1], [0, 0, 1, 1], [], []>} : vector<64x8xbf16>, vector<8x32xbf16>, vector<64x32xf32> -> vector<64x32xf32>
    %110 = arith.addf %89, %109 : vector<64x32xf32>
    %111 = vector.extract_strided_slice %41 {offsets = [0, 0, 24], sizes = [8, 8, 8], strides = [1, 1, 1]} : vector<8x8x96xf32> to vector<8x8x8xf32>
    %112 = vector.extract_strided_slice %41 {offsets = [0, 0, 56], sizes = [8, 8, 8], strides = [1, 1, 1]} : vector<8x8x96xf32> to vector<8x8x8xf32>
    %113 = vector.extract_strided_slice %41 {offsets = [0, 0, 88], sizes = [8, 8, 8], strides = [1, 1, 1]} : vector<8x8x96xf32> to vector<8x8x8xf32>
    "tpu.trace_start"() <{level = 10 : i32, message = "bqd,bkd->bqk"}> : () -> ()
    %cst_39 = arith.constant dense<0.000000e+00> : vector<8x8x8xf32>
    %114 = tpu.matmul %111, %112, %cst_39 {dimension_numbers = #tpu.dot_dimension_numbers<[2], [2], [1], [1], [0, 0, 0, 1, 1, 1], [0], [0]>} : vector<8x8x8xf32>, vector<8x8x8xf32>, vector<8x8x8xf32> -> vector<8x8x8xf32>
    "tpu.trace_stop"() : () -> ()
    %115 = arith.addf %114, %45 : vector<8x8x8xf32>
    %cst_40 = arith.constant dense<0xFF800000> : vector<8x8xf32>
    %116 = vector.multi_reduction <maximumf>, %115, %cst_40 [2] : vector<8x8x8xf32> to vector<8x8xf32>
    %117 = vector.shape_cast %116 : vector<8x8xf32> to vector<8x8x1xf32>
    %118 = vector.broadcast %117 : vector<8x8x1xf32> to vector<8x8x8xf32>
    %119 = arith.subf %115, %118 : vector<8x8x8xf32>
    %120 = math.exp %119 : vector<8x8x8xf32>
    %cst_41 = arith.constant dense<0.000000e+00> : vector<8x8xf32>
    %121 = vector.multi_reduction <add>, %120, %cst_41 [2] : vector<8x8x8xf32> to vector<8x8xf32>
    %122 = vector.shape_cast %121 : vector<8x8xf32> to vector<8x8x1xf32>
    %123 = tpu.reciprocal %122 {approx = true} : vector<8x8x1xf32> -> vector<8x8x1xf32>
    %124 = vector.broadcast %123 : vector<8x8x1xf32> to vector<8x8x8xf32>
    %125 = arith.mulf %120, %124 : vector<8x8x8xf32>
    "tpu.trace_start"() <{level = 10 : i32, message = "bqk,bkd->bqd"}> : () -> ()
    %cst_42 = arith.constant dense<0.000000e+00> : vector<8x8x8xf32>
    %126 = tpu.matmul %125, %113, %cst_42 {dimension_numbers = #tpu.dot_dimension_numbers<[2], [1], [1], [2], [0, 0, 0, 1, 1, 2], [0], [0]>} : vector<8x8x8xf32>, vector<8x8x8xf32>, vector<8x8x8xf32> -> vector<8x8x8xf32>
    "tpu.trace_stop"() : () -> ()
    %127 = vector.shape_cast %126 : vector<8x8x8xf32> to vector<64x8xf32>
    %128 = arith.truncf %127 : vector<64x8xf32> to vector<64x8xbf16>
    %129 = vector.extract_strided_slice %12 {offsets = [24, 0], sizes = [8, 32], strides = [1, 1]} : vector<32x32xbf16> to vector<8x32xbf16>
    %cst_43 = arith.constant dense<0.000000e+00> : vector<64x32xf32>
    %130 = tpu.matmul %128, %129, %cst_43 {dimension_numbers = #tpu.dot_dimension_numbers<[1], [0], [0], [1], [0, 0, 1, 1], [], []>} : vector<64x8xbf16>, vector<8x32xbf16>, vector<64x32xf32> -> vector<64x32xf32>
    %131 = arith.addf %110, %130 : vector<64x32xf32>
    %cst_44 = arith.constant dense<0.000000e+00> : vector<64xf32>
    %132 = vector.multi_reduction <add>, %131, %cst_44 [1] : vector<64x32xf32> to vector<64xf32>
    %133 = vector.shape_cast %132 : vector<64xf32> to vector<64x1xf32>
    %cst_45 = arith.constant 3.200000e+01 : f32
    %134 = vector.broadcast %cst_45 : f32 to vector<64x1xf32>
    %135 = arith.divf %133, %134 : vector<64x1xf32>
    %136 = vector.broadcast %135 : vector<64x1xf32> to vector<64x32xf32>
    %137 = arith.subf %131, %136 : vector<64x32xf32>
    %138 = arith.mulf %137, %137 : vector<64x32xf32>
    %cst_46 = arith.constant dense<0.000000e+00> : vector<64xf32>
    %139 = vector.multi_reduction <add>, %138, %cst_46 [1] : vector<64x32xf32> to vector<64xf32>
    %140 = vector.shape_cast %139 : vector<64xf32> to vector<64x1xf32>
    %cst_47 = arith.constant 3.200000e+01 : f32
    %141 = vector.broadcast %cst_47 : f32 to vector<64x1xf32>
    %142 = arith.divf %140, %141 : vector<64x1xf32>
    %143 = vector.broadcast %135 : vector<64x1xf32> to vector<64x32xf32>
    %144 = arith.subf %131, %143 : vector<64x32xf32>
    %cst_48 = arith.constant 9.99999974E-6 : f32
    %145 = vector.broadcast %cst_48 : f32 to vector<64x1xf32>
    %146 = arith.addf %142, %145 : vector<64x1xf32>
    %147 = math.rsqrt %146 : vector<64x1xf32>
    %148 = vector.broadcast %147 : vector<64x1xf32> to vector<64x32xf32>
    %149 = arith.mulf %144, %148 : vector<64x32xf32>
    %150 = vector.broadcast %4 : vector<1x32xf32> to vector<64x32xf32>
    %151 = arith.mulf %149, %150 : vector<64x32xf32>
    %152 = vector.broadcast %5 : vector<1x32xf32> to vector<64x32xf32>
    %153 = arith.addf %151, %152 : vector<64x32xf32>
    %154 = arith.truncf %153 : vector<64x32xf32> to vector<64x32xbf16>
    %cst_49 = arith.constant dense<0.000000e+00> : vector<64x32xf32>
    %155 = tpu.matmul %154, %13, %cst_49 {dimension_numbers = #tpu.dot_dimension_numbers<[1], [0], [0], [1], [0, 0, 1, 1], [], []>} : vector<64x32xbf16>, vector<32x32xbf16>, vector<64x32xf32> -> vector<64x32xf32>
    %156 = vector.broadcast %7 : vector<1x32xf32> to vector<64x32xf32>
    %157 = arith.addf %155, %156 : vector<64x32xf32>
    %cst_50 = arith.constant 0.000000e+00 : f32
    %158 = vector.broadcast %cst_50 : f32 to vector<64x32xf32>
    %159 = arith.maximumf %157, %158 : vector<64x32xf32>
    %160 = arith.truncf %159 : vector<64x32xf32> to vector<64x32xbf16>
    %cst_51 = arith.constant dense<0.000000e+00> : vector<64x32xf32>
    %161 = tpu.matmul %160, %14, %cst_51 {dimension_numbers = #tpu.dot_dimension_numbers<[1], [0], [0], [1], [0, 0, 1, 1], [], []>} : vector<64x32xbf16>, vector<32x32xbf16>, vector<64x32xf32> -> vector<64x32xf32>
    %162 = vector.broadcast %8 : vector<1x32xf32> to vector<64x32xf32>
    %163 = arith.addf %161, %162 : vector<64x32xf32>
    %164 = arith.addf %163, %153 : vector<64x32xf32>
    %c0_52 = arith.constant 0 : index
    %c0_53 = arith.constant 0 : index
    %165 = vector.load %arg6[%c0_52, %c0_53] : memref<64x32xf32, #tpu.memory_space<vmem>>, vector<64x32xf32>
    tpu.vector_store %arg6[%c0_52, %c0_53], %164 {strides = array<i32>} : memref<64x32xf32, #tpu.memory_space<vmem>>, vector<64x32xf32>,
    return
  }
  func.func @transform_0(%arg0: i32) -> (i32, i32) {
    %c0_i32 = arith.constant 0 : i32
    %c0_i32_0 = arith.constant 0 : i32
    return %arg0, %c0_i32 : i32, i32
  }
  func.func @transform_1(%arg0: i32) -> (i32, i32) {
    %c0_i32 = arith.constant 0 : i32
    %c0_i32_0 = arith.constant 0 : i32
    %c0_i32_1 = arith.constant 0 : i32
    return %c0_i32, %c0_i32_0 : i32, i32
  }
  func.func @transform_2(%arg0: i32) -> (i32, i32) {
    %c0_i32 = arith.constant 0 : i32
    %c0_i32_0 = arith.constant 0 : i32
    %c0_i32_1 = arith.constant 0 : i32
    return %c0_i32, %c0_i32_0 : i32, i32
  }
  func.func @transform_3(%arg0: i32) -> (i32, i32) {
    %c0_i32 = arith.constant 0 : i32
    %c0_i32_0 = arith.constant 0 : i32
    %c0_i32_1 = arith.constant 0 : i32
    return %c0_i32, %c0_i32_0 : i32, i32
  }
  func.func @transform_4(%arg0: i32) -> (i32, i32) {
    %c0_i32 = arith.constant 0 : i32
    %c0_i32_0 = arith.constant 0 : i32
    %c0_i32_1 = arith.constant 0 : i32
    return %c0_i32, %c0_i32_0 : i32, i32
  }
  func.func @transform_5(%arg0: i32) -> (i32, i32) {
    %c0_i32 = arith.constant 0 : i32
    %c0_i32_0 = arith.constant 0 : i32
    return %arg0, %c0_i32 : i32, i32
  }
}

</mosaic_0001>

<bundles_post_ra>
// kernel: tpu_custom_call.1
= control target key start
LH: loop header
LB: loop body
LE: loop exit
PB: predicated region body
PF: predicated region fallthrough
CT: control target
= control target key end

     0   :  { %vm62_vm0 = vcmask 261120   ;;  %vm7230_vm1 = vmmov 0   ;;  %vm305_vm2 = vcmask 64512   ;;  %s7232_s14 = smov 64   ;;  %s7233_s15 = smov 120   ;;  %vm1631_vm3 = vcmask 1043456   ;;  %s8271_s0 = inlined_call_operand.vmem [shape: bf16[64,32], index: 0, kind: input, shape index: {}]   ;;  %s8272_s1 = inlined_call_operand.vmem [shape: bf16[33,96], index: 1, kind: input, shape index: {}]   ;;  %s8273_s3 = inlined_call_operand.vmem [shape: f32[7,32], index: 3, kind: input, shape index: {}]   ;;  %s8274_s4 = inlined_call_operand.vmem [shape: f32[8,8], index: 4, kind: input, shape index: {}]   ;;  %s8275_s2 = inlined_call_operand.vmem [shape: bf16[96,32], index: 2, kind: input, shape index: {}]   ;;  %s8276_s5 = inlined_call_operand.vmem [shape: f32[64,32], index: 5, kind: output, shape index: {}]  }
   0x1   :  { %v6432_v0 = vld [vmem:[%s8271_s0] sm:$0xff]   ;;  %v6447_v1 = vld [vmem:[%s8271_s0 + $0x8] sm:$0xff]   ;;  %v6448_v6 = vld [vmem:[%s8271_s0 + $0x10] sm:$0xff]   ;;  %s7234_s16 = smov 88   ;;  %s7235_s19 = smov 56  }
   0x2   :  { %v6433_v2 = vunpack.c.l.bf16 %v6432_v0  ;;  %v6437_v3 = vunpack.c.l.bf16 %v6447_v1  ;;  %v6434_v4 = vunpack.c.h.bf16 %v6432_v0  ;;  %v6438_v5 = vunpack.c.h.bf16 %v6447_v1  ;;  %v6449_v13 = vld [vmem:[%s8271_s0 + $0x18] sm:$0xff]   ;;  %v7061_v60 = vld [vmem:[%s8272_s1] sm:$0xff]   ;;  %v7062_v61 = vld [vmem:[%s8272_s1 + $0x8] sm:$0xff]   ;;  %s7236_s20 = smov 112   ;;  %s7237_s21 = smov 80  }
   0x3   :  { %v6441_v11 = vunpack.c.l.bf16 %v6448_v6  ;;  %v6442_v12 = vunpack.c.h.bf16 %v6448_v6  ;;  %v6445_v16 = vunpack.c.l.bf16 %v6449_v13  ;;  %v6446_v17 = vunpack.c.h.bf16 %v6449_v13  ;;  %6616 = vmatprep.subr.bf16.mxu0 %v7061_v60  ;;  %s7239_s0 = smov 104   ;;  %s7240_s26 = smov 72  }
   0x4   :  { %v63_v7 = vsel %vm62_vm0, %v6433_v2, 0.0  ;;  %v69_v8 = vsel %vm62_vm0, %v6437_v3, 0.0  ;;  %v66_v9 = vsel %vm62_vm0, %v6434_v4, 0.0  ;;  %v72_v10 = vsel %vm62_vm0, %v6438_v5, 0.0  ;;  %6617 = vmatpush3.bf16.msra.mxu0 %v7061_v60  ;;  %s7241_s29 = smov 40  }
   0x5   :  { %64 = vadd.xlane.f32.xlu0 %v63_v7  ;;  %70 = vadd.xlane.f32.xlu1 %v69_v8  ;;  %v75_v14 = vsel %vm62_vm0, %v6441_v11, 0.0  ;;  %v78_v15 = vsel %vm62_vm0, %v6442_v12, 0.0  ;;  %v81_v18 = vsel %vm62_vm0, %v6445_v16, 0.0  ;;  %v84_v19 = vsel %vm62_vm0, %v6446_v17, 0.0 }
   0x6   :  { %6618 = vmatprep.subr.bf16.mxu0 %v7062_v61 }
   0x8   :  { %6619 = vmatpush3.bf16.msra.mxu0 %v7062_v61 }
   0x9   :  { %67 = vadd.xlane.f32.xlu0 %v66_v9  ;;  %73 = vadd.xlane.f32.xlu1 %v72_v10 }
   0xd   :  { %76 = vadd.xlane.f32.xlu0 %v75_v14  ;;  %79 = vadd.xlane.f32.xlu1 %v78_v15 }
  0x11   :  { %82 = vadd.xlane.f32.xlu0 %v81_v18  ;;  %85 = vadd.xlane.f32.xlu1 %v84_v19 }
  0x92   :  { %v65_v20 = vpop.xlane.xlu0 %64  ;;  %v71_v21 = vpop.xlane.xlu1 %70 }
  0x93   :  { %v88_v22 = vmul.f32 0.03125, %v65_v20  ;;  %v90_v23 = vmul.f32 0.03125, %v71_v21 }
  0x95   :  { %v7292_v24 = vsub.f32 %v6433_v2, %v88_v22  ;;  %v7294_v25 = vsub.f32 %v6437_v3, %v90_v23  ;;  %v6294_v23 = vld [vmem:[%s8273_s3] ss:$0 sm:$0xff] }
  0x96   :  { %v68_v26 = vpop.xlane.xlu0 %67  ;;  %v74_v27 = vpop.xlane.xlu1 %73 }
  0x97   :  { %v89_v28 = vmul.f32 0.03125, %v68_v26  ;;  %v91_v29 = vmul.f32 0.03125, %v74_v27  ;;  %v104_v30 = vmul.f32 %v7292_v24, %v7292_v24  ;;  %v106_v31 = vmul.f32 %v7294_v25, %v7294_v25 }
  0x99   :  { %v7300_v32 = vsub.f32 %v6434_v4, %v89_v28  ;;  %v7302_v33 = vsub.f32 %v6438_v5, %v91_v29  ;;  %v112_v34 = vsel %vm62_vm0, %v104_v30, 0.0  ;;  %v118_v37 = vsel %vm62_vm0, %v106_v31, 0.0  ;;  %v6295_v31 = vld [vmem:[%s8273_s3 + $0x1] ss:$0 sm:$0xff] }
  0x9a   :  { %113 = vadd.xlane.f32.xlu0 %v112_v34  ;;  %v77_v35 = vpop.xlane.xlu0 %76  ;;  %v80_v36 = vpop.xlane.xlu1 %79 }
  0x9b   :  { %v92_v38 = vmul.f32 0.03125, %v77_v35  ;;  %v93_v39 = vmul.f32 0.03125, %v80_v36  ;;  %v105_v40 = vmul.f32 %v7300_v32, %v7300_v32  ;;  %v107_v41 = vmul.f32 %v7302_v33, %v7302_v33 }
  0x9d   :  { %v7310_v42 = vsub.f32 %v6441_v11, %v92_v38  ;;  %v7312_v43 = vsub.f32 %v6442_v12, %v93_v39  ;;  %v115_v44 = vsel %vm62_vm0, %v105_v40, 0.0  ;;  %v121_v47 = vsel %vm62_vm0, %v107_v41, 0.0 }
  0x9e   :  { %119 = vadd.xlane.f32.xlu0 %v118_v37  ;;  %116 = vadd.xlane.f32.xlu1 %v115_v44  ;;  %v83_v45 = vpop.xlane.xlu0 %82  ;;  %v86_v46 = vpop.xlane.xlu1 %85 }
  0x9f   :  { %v94_v48 = vmul.f32 0.03125, %v83_v45  ;;  %v95_v49 = vmul.f32 0.03125, %v86_v46  ;;  %v108_v50 = vmul.f32 %v7310_v42, %v7310_v42  ;;  %v109_v51 = vmul.f32 %v7312_v43, %v7312_v43 }
  0xa1   :  { %v7320_v52 = vsub.f32 %v6445_v16, %v94_v48  ;;  %v7322_v53 = vsub.f32 %v6446_v17, %v95_v49  ;;  %v124_v54 = vsel %vm62_vm0, %v108_v50, 0.0  ;;  %v127_v55 = vsel %vm62_vm0, %v109_v51, 0.0 }
  0xa2   :  { %122 = vadd.xlane.f32.xlu1 %v121_v47  ;;  %125 = vadd.xlane.f32.xlu0 %v124_v54  ;;  %v6302_v54 = vld [vmem:[%s8273_s3 + $0x4] ss:$0 sm:$0xff] }
  0xa3   :  { %v110_v56 = vmul.f32 %v7320_v52, %v7320_v52  ;;  %v111_v57 = vmul.f32 %v7322_v53, %v7322_v53 }
  0xa5   :  { %v130_v58 = vsel %vm62_vm0, %v110_v56, 0.0  ;;  %v133_v59 = vsel %vm62_vm0, %v111_v57, 0.0 }
  0xa6   :  { %128 = vadd.xlane.f32.xlu1 %v127_v55  ;;  %131 = vadd.xlane.f32.xlu0 %v130_v58 }
  0xaa   :  { %134 = vadd.xlane.f32.xlu1 %v133_v59 }
 0x127   :  { %v114_v62 = vpop.xlane.xlu0 %113 }
 0x128   :  { %v136_v63 = vmul.f32 0.03125, %v114_v62 }
 0x12a   :  { %v144_v0 = vadd.f32 1e-05, %v136_v63 }
 0x12b   :  { %v117_v1 = vpop.xlane.xlu1 %116  ;;  %v120_v2 = vpop.xlane.xlu0 %119 }
 0x12c   :  { %7067 = vrsqrt.f32 %v144_v0  ;;  %v137_v3 = vmul.f32 0.03125, %v117_v1  ;;  %v138_v4 = vmul.f32 0.03125, %v120_v2  ;;  %v7229_v2 = vmov 0.0  }
 0x12d   :  { %6628 = vmatprep.subr.mxu0 %v7229_v2  ;;  %6633 = vmatprep.subr.mxu1 %v7229_v2 }
 0x12e   :  { %v145_v5 = vadd.f32 1e-05, %v137_v3  ;;  %v146_v6 = vadd.f32 1e-05, %v138_v4  ;;  %v48_v4 = vld [vmem:[%s8272_s1 + $0x10] sm:$0x1]  ;;  %6635 = vmatprep.mubr.msk.f32.mxu1 %vm7230_vm1, %v7229_v2 }
 0x12f   :  { %v123_v7 = vpop.xlane.xlu1 %122  ;;  %v126_v8 = vpop.xlane.xlu0 %125  ;;  %s7231_s1 = smov 96  }
 0x130   :  { %7069 = vrsqrt.f32 %v145_v5  ;;  %v139_v9 = vmul.f32 0.03125, %v123_v7  ;;  %v140_v10 = vmul.f32 0.03125, %v126_v8  ;;  %v49_v5 = vunpack.c.l.bf16 %v48_v4 }
 0x131   :  { %7071 = vrsqrt.f32 %v146_v6 }
 0x132   :  { %v147_v11 = vadd.f32 1e-05, %v139_v9  ;;  %v148_v12 = vadd.f32 1e-05, %v140_v10 }
 0x133   :  { %v129_v13 = vpop.xlane.xlu1 %128  ;;  %v132_v14 = vpop.xlane.xlu0 %131 }
 0x134   :  { %7073 = vrsqrt.f32 %v147_v11  ;;  %v141_v15 = vmul.f32 0.03125, %v129_v13  ;;  %v142_v16 = vmul.f32 0.03125, %v132_v14 }
 0x135   :  { %7075 = vrsqrt.f32 %v148_v12 }
 0x136   :  { %v7068_v17 = vpop.eup %7067  ;;  %v149_v18 = vadd.f32 1e-05, %v141_v15  ;;  %v150_v19 = vadd.f32 1e-05, %v142_v16 }
 0x137   :  { %v135_v20 = vpop.xlane.xlu1 %134  ;;  %v160_v21 = vmul.f32 %v7068_v17, %v7292_v24 }
 0x138   :  { %7077 = vrsqrt.f32 %v149_v18  ;;  %v143_v22 = vmul.f32 0.03125, %v135_v20 }
 0x139   :  { %7079 = vrsqrt.f32 %v150_v19  ;;  %v172_v30 = vmul.f32 %v6294_v23, %v160_v21 }
 0x13a   :  { %v7070_v26 = vpop.eup %7069  ;;  %v151_v27 = vadd.f32 1e-05, %v143_v22 }
 0x13b   :  { %v7072_v28 = vpop.eup %7071  ;;  %v161_v29 = vmul.f32 %v7070_v26, %v7300_v32  ;;  %v7347_v37 = vadd.f32 %v6295_v31, %v172_v30 }
 0x13c   :  { %7081 = vrsqrt.f32 %v151_v27  ;;  %v162_v24 = vmul.f32 %v7072_v28, %v7294_v25 }
 0x13d   :  { %v173_v34 = vmul.f32 %v6294_v23, %v161_v29 }
 0x13e   :  { %v7074_v35 = vpop.eup %7073  ;;  %v174_v40 = vmul.f32 %v6294_v23, %v162_v24 }
 0x13f   :  { %v7076_v36 = vpop.eup %7075  ;;  %v7349_v38 = vadd.f32 %v6295_v31, %v173_v34  ;;  %v163_v39 = vmul.f32 %v7074_v35, %v7302_v33  ;;  %v7463_v35 = vld [vmem:[%s8274_s4] sm:$0xff] }
 0x140   :  { %v164_v32 = vmul.f32 %v7076_v36, %v7310_v42  ;;  %v7356_v25 = vadd.f32 %v6295_v31, %v174_v40 }
 0x141   :  { %v192_v41 = vpack.c.bf16 %v7349_v38, %v7347_v37  ;;  %v175_v44 = vmul.f32 %v6294_v23, %v163_v39 }
 0x142   :  { %v7078_v45 = vpop.eup %7077  ;;  %v176_v46 = vmul.f32 %v6294_v23, %v164_v32 }
 0x143   :  { %v7080_v47 = vpop.eup %7079  ;;  %6620 = vmatprep.mubr.msk.bf16.mxu0 %vm62_vm0, %v192_v41  ;;  %v7358_v48 = vadd.f32 %v6295_v31, %v175_v44  ;;  %v165_v49 = vmul.f32 %v7078_v45, %v7312_v43 }
 0x144   :  { %v188_v50 = vadd.f32 %v6295_v31, %v176_v46  ;;  %v166_v33 = vmul.f32 %v7080_v47, %v7320_v52 }
 0x145   :  { %v193_v42 = vpack.c.bf16 %v7358_v48, %v7356_v25  ;;  %v177_v51 = vmul.f32 %v6294_v23, %v165_v49 }
 0x146   :  { %v7082_v55 = vpop.eup %7081  ;;  %v178_v56 = vmul.f32 %v6294_v23, %v166_v33  ;;  %v7367_v57 = vadd.f32 %v6302_v54, %v188_v50 }
 0x147   :  { %6621 = vmatmul.mubr.msk.bf16.vlgmr.msra.gmra.mrb[0].mxu0 %vm62_vm0, %v193_v42  ;;  %v189_v58 = vadd.f32 %v6295_v31, %v177_v51  ;;  %v167_v43 = vmul.f32 %v7082_v55, %v7322_v53  ;;  %v196_v53 = vlaneseq }
 0x148   :  { %v190_v59 = vadd.f32 %v6295_v31, %v178_v56 }
 0x149   :  { %v194_v60 = vpack.c.bf16 %v189_v58, %v188_v50  ;;  %v179_v52 = vmul.f32 %v6294_v23, %v167_v43  ;;  %v7371_v61 = vadd.f32 %v6302_v54, %v189_v58  ;;  %v197_v3 = vshrl.u32 %v196_v53, 7 }
 0x14a   :  { %v7373_v62 = vadd.f32 %v6302_v54, %v190_v59 }
 0x14b   :  { %6624 = vmatprep.mubr.msk.bf16.mxu0 %vm62_vm0, %v194_v60  ;;  %v191_v63 = vadd.f32 %v6295_v31, %v179_v52  ;;  %v198_v6 = vsub.s32 0, %v197_v3 }
 0x14d   :  { %v195_v0 = vpack.c.bf16 %v191_v63, %v190_v59  ;;  %v7376_v1 = vadd.f32 %v6302_v54, %v191_v63  ;;  %v199_v7 = vrot.slane %v49_v5, %v198_v6 }
 0x14f   :  { %6625 = vmatmul.mubr.msk.bf16.gmra.mrb[4].mxu0 %vm62_vm0, %v195_v0 }
 0x150   :  { %6630 = vmatprep.mubr.msk.f32.mxu0 %vm7230_vm1, %v7229_v2 }
 0x21a   :  { %v6622_v8 = vpop.f32.mrb[0].mxu0 }
 0x21b   :  { %v7388_v9 = vadd.f32 %v6622_v8, %v199_v7  ;;  %v258_v10 = vpop.f32.mrb[1].mxu0 }
 0x21c   :  { %v7390_v11 = vadd.f32 %v258_v10, %v199_v7  ;;  %v6623_v12 = vpop.f32.mrb[2].mxu0 }
 0x21d   :  { %v7392_v13 = vadd.f32 %v6623_v12, %v199_v7  ;;  %v261_v14 = vpop.f32.mrb[3].mxu0 }
 0x21e   :  { %v7394_v15 = vadd.f32 %v261_v14, %v199_v7  ;;  %303 = vrot.lane.b32.xlu1 %v7390_v11, %s7231_s1 }
 0x220   :  { %381 = vrot.lane.b32.xlu0 %v7394_v15, %s7231_s1 }
 0x222   :  { %458 = vrot.lane.b32.xlu1 %v7388_v9, %s7231_s1  ;;  %v6626_v16 = vpop.f32.mrb[4].mxu0 }
 0x223   :  { %v7399_v17 = vadd.f32 %v6626_v16, %v199_v7  ;;  %v274_v18 = vpop.f32.mrb[5].mxu0 }
 0x224   :  { %v7401_v19 = vadd.f32 %v274_v18, %v199_v7  ;;  %v6627_v20 = vpop.f32.mrb[6].mxu0 }
 0x225   :  { %v7403_v21 = vadd.f32 %v6627_v20, %v199_v7  ;;  %v277_v22 = vpop.f32.mrb[7].mxu0 }
 0x226   :  { %v7405_v23 = vadd.f32 %v277_v22, %v199_v7  ;;  %535 = vrot.lane.b32.xlu1 %v7392_v13, %s7231_s1  ;;  %612 = vrot.lane.b32.xlu0 %v7401_v19, %s7231_s1 }
 0x22a   :  { %689 = vrot.lane.b32.xlu1 %v7405_v23, %s7231_s1  ;;  %766 = vrot.lane.b32.xlu0 %v7399_v17, %s7231_s1 }
 0x22e   :  { %843 = vrot.lane.b32.xlu1 %v7403_v21, %s7231_s1 }
 0x290   :  { %v304_v26 = vpop.permute.xlu1 %303 }
 0x291   :  { %6629 = vmatpush3.xpose.msk.msra.mxu0 %vm305_vm2, %v304_v26 }
 0x292   :  { %v382_v27 = vpop.permute.xlu0 %381  ;;  %6653 = vmatprep.subr.mxu0 %v7229_v2 }
 0x293   :  { %6634 = vmatpush3.xpose.msk.msra.mxu1 %vm305_vm2, %v382_v27 }
 0x294   :  { %v459_v28 = vpop.permute.xlu1 %458  ;;  %6631 = vmatmul.mubr.msk.f32.vlgmr.msra.gmra.mrb[8].mxu0 %vm305_vm2, %v7390_v11  ;;  %6638 = vmatprep.subr.mxu1 %v7229_v2 }
 0x295   :  { %6655 = vmatprep.mubr.msk.f32.mxu0 %vm7230_vm1, %v7229_v2 }
 0x296   :  { %6636 = vmatmul.mubr.msk.f32.vlgmr.msra.gmra.mrb[0].mxu1 %vm305_vm2, %v7394_v15 }
 0x297   :  { %6639 = vmatpush3.xpose.msk.msra.mxu1 %vm305_vm2, %v459_v28  ;;  %6640 = vmatprep.mubr.msk.f32.mxu1 %vm7230_vm1, %v7229_v2 }
 0x298   :  { %v536_v29 = vpop.permute.xlu1 %535  ;;  %6643 = vmatprep.subr.mxu1 %v7229_v2  ;;  %v613_v30 = vpop.permute.xlu0 %612 }
 0x29a   :  { %6641 = vmatmul.mubr.msk.f32.vlgmr.msra.gmra.mrb[2].mxu1 %vm305_vm2, %v7388_v9 }
 0x29b   :  { %6644 = vmatpush3.xpose.msk.msra.mxu1 %vm305_vm2, %v536_v29  ;;  %6645 = vmatprep.mubr.msk.f32.mxu1 %vm7230_vm1, %v7229_v2 }
 0x29c   :  { %v690_v31 = vpop.permute.xlu1 %689  ;;  %6648 = vmatprep.subr.mxu1 %v7229_v2  ;;  %v767_v34 = vpop.permute.xlu0 %766 }
 0x29d   :  { %6654 = vmatpush3.xpose.msk.msra.mxu0 %vm305_vm2, %v690_v31 }
 0x29e   :  { %6646 = vmatmul.mubr.msk.f32.vlgmr.msra.gmra.mrb[4].mxu1 %vm305_vm2, %v7392_v13  ;;  %6663 = vmatprep.subr.mxu0 %v7229_v2 }
 0x29f   :  { %6649 = vmatpush3.xpose.msk.msra.mxu1 %vm305_vm2, %v613_v30  ;;  %6650 = vmatprep.mubr.msk.f32.mxu1 %vm7230_vm1, %v7229_v2 }
 0x2a0   :  { %6656 = vmatmul.mubr.msk.f32.vlgmr.msra.gmra.mrb[10].mxu0 %vm305_vm2, %v7405_v23  ;;  %v844_v24 = vpop.permute.xlu1 %843  ;;  %6658 = vmatprep.subr.mxu1 %v7229_v2 }
 0x2a1   :  { %6664 = vmatpush3.xpose.msk.msra.mxu0 %vm305_vm2, %v844_v24  ;;  %6665 = vmatprep.mubr.msk.f32.mxu0 %vm7230_vm1, %v7229_v2 }
 0x2a2   :  { %6651 = vmatmul.mubr.msk.f32.vlgmr.msra.gmra.mrb[6].mxu1 %vm305_vm2, %v7401_v19  ;;  %6673 = vmatprep.subr.mxu0 %v7229_v2 }
 0x2a3   :  { %6659 = vmatpush3.xpose.msk.msra.mxu1 %vm305_vm2, %v767_v34  ;;  %6660 = vmatprep.mubr.msk.f32.mxu1 %vm7230_vm1, %v7229_v2 }
 0x2a4   :  { %6666 = vmatmul.mubr.msk.f32.vlgmr.msra.gmra.mrb[12].mxu0 %vm305_vm2, %v7403_v21  ;;  %6668 = vmatprep.subr.mxu1 %v7229_v2 }
 0x2a5   :  { %6675 = vmatprep.mubr.msk.f32.mxu0 %vm7230_vm1, %v7229_v2 }
 0x2a6   :  { %6661 = vmatmul.mubr.msk.f32.vlgmr.msra.gmra.mrb[8].mxu1 %vm305_vm2, %v7399_v17 }
 0x2a7   :  { %6670 = vmatprep.mubr.msk.f32.mxu1 %vm7230_vm1, %v7229_v2 }
 0x367   :  { %v376_v36 = vpop.f32.mrb[8].mxu0 }
 0x368   :  { %v377_v39 = vadd.f32 %v376_v36, %v7463_v35  ;;  %v6632_v40 = vpop.f32.mrb[9].mxu0 }
 0x369   :  { %v453_v32 = vpop.f32.mrb[0].mxu1 }
 0x36a   :  { %v454_v41 = vadd.f32 %v453_v32, %v7463_v35  ;;  %v6637_v44 = vpop.f32.mrb[1].mxu1  ;;  %v919_v45 = vsel %vm305_vm2, %v377_v39, -inf }
 0x36b   :  { %920 = vmax.xlane.f32.xlu0 %v919_v45 }
 0x36c   :  { %v922_v46 = vsel %vm305_vm2, %v454_v41, -inf }
 0x36d   :  { %923 = vmax.xlane.f32.xlu1 %v922_v46  ;;  %v530_v47 = vpop.f32.mrb[2].mxu1 }
 0x36e   :  { %v531_v49 = vadd.f32 %v530_v47, %v7463_v35  ;;  %v6642_v50 = vpop.f32.mrb[3].mxu1 }
 0x370   :  { %v925_v33 = vsel %vm305_vm2, %v531_v49, -inf }
 0x371   :  { %926 = vmax.xlane.f32.xlu0 %v925_v33  ;;  %v607_v42 = vpop.f32.mrb[4].mxu1 }
 0x372   :  { %v608_v51 = vadd.f32 %v607_v42, %v7463_v35  ;;  %v6647_v54 = vpop.f32.mrb[5].mxu1 }
 0x373   :  { %v761_v55 = vpop.f32.mrb[10].mxu0 }
 0x374   :  { %v762_v56 = vadd.f32 %v761_v55, %v7463_v35  ;;  %v6657_v58 = vpop.f32.mrb[11].mxu0  ;;  %v928_v43 = vsel %vm305_vm2, %v608_v51, -inf }
 0x375   :  { %929 = vmax.xlane.f32.xlu0 %v928_v43  ;;  %v684_v59 = vpop.f32.mrb[6].mxu1 }
 0x376   :  { %v685_v60 = vadd.f32 %v684_v59, %v7463_v35  ;;  %v6652_v52 = vpop.f32.mrb[7].mxu1  ;;  %v934_v63 = vsel %vm305_vm2, %v762_v56, -inf }
 0x377   :  { %v915_v0 = vpop.f32.mrb[12].mxu0  ;;  %935 = vmax.xlane.f32.xlu1 %v934_v63 }
 0x378   :  { %v916_v53 = vadd.f32 %v915_v0, %v7463_v35  ;;  %v6667_v3 = vpop.f32.mrb[13].mxu0  ;;  %v931_v4 = vsel %vm305_vm2, %v685_v60, -inf }
 0x379   :  { %932 = vmax.xlane.f32.xlu0 %v931_v4  ;;  %v838_v5 = vpop.f32.mrb[8].mxu1 }
 0x37a   :  { %v839_v6 = vadd.f32 %v838_v5, %v7463_v35  ;;  %v6662_v7 = vpop.f32.mrb[9].mxu1  ;;  %v940_v8 = vsel %vm305_vm2, %v916_v53, -inf }
 0x37b   :  { %941 = vmax.xlane.f32.xlu1 %v940_v8 }
 0x37c   :  { %v937_v10 = vsel %vm305_vm2, %v839_v6, -inf }
 0x37d   :  { %938 = vmax.xlane.f32.xlu0 %v937_v10 }
 0x38c   :  { %1083 = vrot.lane.b32.xlu1 %v7394_v15, %s7232_s14 }
 0x390   :  { %1159 = vrot.lane.b32.xlu1 %v7388_v9, %s7232_s14 }
 0x393   :  { %1007 = vrot.lane.b32.xlu0 %v7390_v11, %s7232_s14 }
 0x394   :  { %1235 = vrot.lane.b32.xlu1 %v7392_v13, %s7232_s14 }
 0x397   :  { %1311 = vrot.lane.b32.xlu0 %v7401_v19, %s7232_s14 }
 0x398   :  { %1387 = vrot.lane.b32.xlu1 %v7405_v23, %s7232_s14 }
 0x3f8   :  { %v921_v12 = vpop.xlane.xlu0 %920 }
 0x3f9   :  { %v943_v14 = vsub.f32 %v377_v39, %v921_v12 }
 0x3fa   :  { %v924_v16 = vpop.xlane.xlu1 %923 }
 0x3fb   :  { %v951_v18 = vmul.f32 1.442695, %v943_v14  ;;  %v944_v20 = vsub.f32 %v454_v41, %v924_v16 }
 0x3fd   :  { %7083 = vpow2.f32 %v951_v18  ;;  %v953_v22 = vmul.f32 1.442695, %v944_v20 }
 0x3fe   :  { %v927_v26 = vpop.xlane.xlu0 %926 }
 0x3ff   :  { %7085 = vpow2.f32 %v953_v22  ;;  %v945_v27 = vsub.f32 %v531_v49, %v927_v26 }
 0x401   :  { %v955_v28 = vmul.f32 1.442695, %v945_v27 }
 0x402   :  { %v930_v29 = vpop.xlane.xlu0 %929 }
 0x403   :  { %7087 = vpow2.f32 %v955_v28  ;;  %v946_v30 = vsub.f32 %v608_v51, %v930_v29 }
 0x404   :  { %v936_v31 = vpop.xlane.xlu1 %935 }
 0x405   :  { %v957_v24 = vmul.f32 1.442695, %v946_v30  ;;  %v948_v34 = vsub.f32 %v762_v56, %v936_v31 }
 0x406   :  { %v933_v36 = vpop.xlane.xlu0 %932 }
 0x407   :  { %v7493_v40 = vpop.eup %7083  ;;  %7089 = vpow2.f32 %v957_v24  ;;  %v961_v39 = vmul.f32 1.442695, %v948_v34  ;;  %v947_v32 = vsub.f32 %v685_v60, %v933_v36 }
 0x408   :  { %v942_v44 = vpop.xlane.xlu1 %941  ;;  %v967_v41 = vsel %vm305_vm2, %v7493_v40, 0.0 }
 0x409   :  { %v7497_v45 = vpop.eup %7085  ;;  %7091 = vpow2.f32 %v961_v39  ;;  %v959_v46 = vmul.f32 1.442695, %v947_v32  ;;  %v950_v47 = vsub.f32 %v916_v53, %v942_v44  ;;  %968 = vadd.xlane.f32.xlu0 %v967_v41 }
 0x40a   :  { %v939_v49 = vpop.xlane.xlu0 %938  ;;  %v970_v50 = vsel %vm305_vm2, %v7497_v45, 0.0 }
 0x40b   :  { %7093 = vpow2.f32 %v959_v46  ;;  %v965_v33 = vmul.f32 1.442695, %v950_v47  ;;  %v949_v42 = vsub.f32 %v839_v6, %v939_v49  ;;  %971 = vadd.xlane.f32.xlu1 %v970_v50 }
 0x40c   :  { %v1084_v51 = vpop.permute.xlu1 %1083 }
 0x40d   :  { %v7501_v54 = vpop.eup %7087  ;;  %7095 = vpow2.f32 %v965_v33  ;;  %v963_v55 = vmul.f32 1.442695, %v949_v42  ;;  %6674 = vmatpush3.msra.mxu0 %v1084_v51 }
 0x40e   :  { %v1008_v56 = vpop.permute.xlu0 %1007  ;;  %v973_v58 = vsel %vm305_vm2, %v7501_v54, 0.0  ;;  %6683 = vmatprep.subr.mxu0 %v7229_v2 }
 0x40f   :  { %7097 = vpow2.f32 %v963_v55  ;;  %974 = vadd.xlane.f32.xlu0 %v973_v58  ;;  %6669 = vmatpush3.msra.mxu1 %v1008_v56 }
 0x410   :  { %6678 = vmatprep.subr.mxu1 %v7229_v2  ;;  %v1160_v6 = vpop.permute.xlu1 %1159 }
 0x411   :  { %v7507_v43 = vpop.eup %7089 }
 0x412   :  { %v976_v59 = vsel %vm305_vm2, %v7507_v43, 0.0  ;;  %v1312_v8 = vpop.permute.xlu0 %1311 }
 0x413   :  { %v7511_v60 = vpop.eup %7091  ;;  %977 = vadd.xlane.f32.xlu1 %v976_v59 }
 0x414   :  { %v982_v63 = vsel %vm305_vm2, %v7511_v60, 0.0  ;;  %v1236_v7 = vpop.permute.xlu1 %1235 }
 0x415   :  { %v7513_v52 = vpop.eup %7093 }
 0x416   :  { %v979_v0 = vsel %vm305_vm2, %v7513_v52, 0.0 }
 0x417   :  { %v7519_v53 = vpop.eup %7095  ;;  %983 = vadd.xlane.f32.xlu1 %v982_v63  ;;  %980 = vadd.xlane.f32.xlu0 %v979_v0 }
 0x418   :  { %v988_v4 = vsel %vm305_vm2, %v7519_v53, 0.0  ;;  %v1388_v10 = vpop.permute.xlu1 %1387 }
 0x419   :  { %v7521_v3 = vpop.eup %7097 }
 0x41a   :  { %v985_v5 = vsel %vm305_vm2, %v7521_v3, 0.0 }
 0x41b   :  { %989 = vadd.xlane.f32.xlu1 %v988_v4  ;;  %986 = vadd.xlane.f32.xlu0 %v985_v5 }
 0x42c   :  { %1539 = vrot.lane.b32.xlu1 %v7403_v21, %s7232_s14 }
 0x430   :  { %1708 = vrot.lane.b32.xlu1 %v7390_v11, %s7233_s15 }
 0x431   :  { %1463 = vrot.lane.b32.xlu0 %v7399_v17, %s7232_s14 }
 0x434   :  { %1786 = vrot.lane.b32.xlu1 %v7394_v15, %s7233_s15 }
 0x435   :  { %1710 = vrot.lane.b32.xlu0 %v7390_v11, %s7234_s16 }
 0x438   :  { %1864 = vrot.lane.b32.xlu1 %v7388_v9, %s7233_s15 }
 0x439   :  { %1788 = vrot.lane.b32.xlu0 %v7394_v15, %s7234_s16 }
 0x43c   :  { %1942 = vrot.lane.b32.xlu1 %v7392_v13, %s7233_s15 }
 0x43d   :  { %1866 = vrot.lane.b32.xlu0 %v7388_v9, %s7234_s16 }
 0x440   :  { %2100 = vrot.lane.b32.xlu1 %v7405_v23, %s7234_s16 }
 0x441   :  { %1944 = vrot.lane.b32.xlu0 %v7392_v13, %s7234_s16 }
 0x444   :  { %2098 = vrot.lane.b32.xlu1 %v7405_v23, %s7233_s15 }
 0x445   :  { %2022 = vrot.lane.b32.xlu0 %v7401_v19, %s7234_s16 }
 0x448   :  { %2256 = vrot.lane.b32.xlu1 %v7403_v21, %s7234_s16 }
 0x449   :  { %2020 = vrot.lane.b32.xlu0 %v7401_v19, %s7233_s15 }
 0x44c   :  { %2254 = vrot.lane.b32.xlu1 %v7403_v21, %s7233_s15 }
 0x44d   :  { %2178 = vrot.lane.b32.xlu0 %v7399_v17, %s7234_s16 }
 0x451   :  { %2176 = vrot.lane.b32.xlu0 %v7399_v17, %s7233_s15 }
 0x496   :  { %v969_v12 = vpop.xlane.xlu0 %968 }
 0x497   :  { %7099 = vrcp.f32 %v969_v12 }
 0x498   :  { %v972_v14 = vpop.xlane.xlu1 %971 }
 0x499   :  { %7101 = vrcp.f32 %v972_v14 }
 0x49c   :  { %v975_v16 = vpop.xlane.xlu0 %974 }
 0x49d   :  { %7103 = vrcp.f32 %v975_v16 }
 0x4a0   :  { %v978_v18 = vpop.xlane.xlu1 %977 }
 0x4a1   :  { %v7100_v20 = vpop.eup %7099  ;;  %7105 = vrcp.f32 %v978_v18 }
 0x4a2   :  { %v999_v22 = vmul.f32 %v7100_v20, %v7493_v40 }
 0x4a3   :  { %v7102_v26 = vpop.eup %7101 }
 0x4a4   :  { %v984_v27 = vpop.xlane.xlu1 %983  ;;  %6671 = vmatmul.mubr.msk.f32.vlgmr.msra.gmra.mrb[10].mxu1 %vm305_vm2, %v999_v22  ;;  %v981_v28 = vpop.xlane.xlu0 %980  ;;  %v1000_v29 = vmul.f32 %v7102_v26, %v7497_v45 }
 0x4a5   :  { %7107 = vrcp.f32 %v984_v27  ;;  %6679 = vmatpush3.msra.mxu1 %v1160_v6  ;;  %6680 = vmatprep.mubr.msk.f32.mxu1 %vm7230_vm1, %v7229_v2 }
 0x4a6   :  { %7109 = vrcp.f32 %v981_v28  ;;  %6676 = vmatmul.mubr.msk.f32.vlgmr.msra.gmra.mrb[14].mxu0 %vm305_vm2, %v1000_v29  ;;  %6688 = vmatprep.subr.mxu1 %v7229_v2 }
 0x4a7   :  { %v7104_v30 = vpop.eup %7103  ;;  %6684 = vmatpush3.msra.mxu0 %v1236_v7  ;;  %6685 = vmatprep.mubr.msk.f32.mxu0 %vm7230_vm1, %v7229_v2 }
 0x4a8   :  { %v990_v31 = vpop.xlane.xlu1 %989  ;;  %v987_v24 = vpop.xlane.xlu0 %986  ;;  %v1001_v34 = vmul.f32 %v7104_v30, %v7501_v54  ;;  %6693 = vmatprep.subr.mxu0 %v7229_v2 }
 0x4a9   :  { %7111 = vrcp.f32 %v990_v31 }
 0x4aa   :  { %7113 = vrcp.f32 %v987_v24  ;;  %6681 = vmatmul.mubr.msk.f32.vlgmr.msra.gmra.mrb[12].mxu1 %vm305_vm2, %v1001_v34 }
 0x4ab   :  { %v7106_v36 = vpop.eup %7105  ;;  %6689 = vmatpush3.msra.mxu1 %v1312_v8  ;;  %6690 = vmatprep.mubr.msk.f32.mxu1 %vm7230_vm1, %v7229_v2 }
 0x4ac   :  { %v1540_v40 = vpop.permute.xlu1 %1539  ;;  %v1002_v39 = vmul.f32 %v7106_v36, %v7507_v43  ;;  %6698 = vmatprep.subr.mxu1 %v7229_v2  ;;  %v1464_v32 = vpop.permute.xlu0 %1463 }
 0x4ae   :  { %6686 = vmatmul.mubr.msk.f32.vlgmr.msra.gmra.mrb[16].mxu0 %vm305_vm2, %v1002_v39 }
 0x4af   :  { %v7108_v44 = vpop.eup %7107  ;;  %6694 = vmatpush3.msra.mxu0 %v1388_v10  ;;  %6695 = vmatprep.mubr.msk.f32.mxu0 %vm7230_vm1, %v7229_v2 }
 0x4b0   :  { %v7110_v41 = vpop.eup %7109  ;;  %v1709_v45 = vpop.permute.xlu1 %1708  ;;  %6703 = vmatprep.subr.mxu0 %v7229_v2  ;;  %v1004_v46 = vmul.f32 %v7108_v44, %v7511_v60 }
 0x4b1   :  { %v1003_v47 = vmul.f32 %v7110_v41, %v7513_v52  ;;  %v1711_v50 = vpop.permute.xlu0 %1710 }
 0x4b2   :  { %6696 = vmatmul.mubr.msk.f32.vlgmr.msra.gmra.mrb[18].mxu0 %vm305_vm2, %v1004_v46 }
 0x4b3   :  { %v7112_v49 = vpop.eup %7111  ;;  %6691 = vmatmul.mubr.msk.f32.vlgmr.msra.gmra.mrb[14].mxu1 %vm305_vm2, %v1003_v47  ;;  %6704 = vmatpush3.msra.mxu0 %v1540_v40 }
 0x4b4   :  { %v7114_v33 = vpop.eup %7113  ;;  %6699 = vmatpush3.msra.mxu1 %v1464_v32  ;;  %v1787_v42 = vpop.permute.xlu1 %1786  ;;  %6700 = vmatprep.mubr.msk.f32.mxu1 %vm7230_vm1, %v7229_v2  ;;  %v1006_v51 = vmul.f32 %v7112_v49, %v7519_v53  ;;  %v50_v53 = vld [vmem:[%s8275_s2] sm:$0xf] }
 0x4b5   :  { %6705 = vmatprep.mubr.msk.f32.mxu0 %vm7230_vm1, %v7229_v2  ;;  %v1005_v54 = vmul.f32 %v7114_v33, %v7521_v3  ;;  %6718 = vmatprep.subr.mxu0 %v7229_v2  ;;  %v1789_v56 = vpop.permute.xlu0 %1788  ;;  %v1633_v3 = vsel %vm1631_vm3, %v50_v53, 0 }
 0x4b6   :  { %6706 = vmatmul.mubr.msk.f32.vlgmr.msra.gmra.mrb[20].mxu0 %vm305_vm2, %v1006_v51  ;;  %7044 = vmatprep.subr.msk.bf16.mxu1 %vm1631_vm3, %v50_v53 }
 0x4b7   :  { %6701 = vmatmul.mubr.msk.f32.vlgmr.msra.gmra.mrb[16].mxu1 %vm305_vm2, %v1005_v54  ;;  %6720 = vmatprep.mubr.msk.f32.mxu0 %vm7230_vm1, %v7229_v2 }
 0x4b8   :  { %v1865_v55 = vpop.permute.xlu1 %1864  ;;  %6709 = vmatpush3.bf16.msra.mxu1 %v1633_v3 }
 0x4b9   :  { %v1867_v43 = vpop.permute.xlu0 %1866  ;;  %6738 = vmatprep.subr.mxu1 %v7229_v2 }
 0x4ba   :  { %6719 = vmatpush3.xpose.msk.msra.mxu0 %vm305_vm2, %v1711_v50 }
 0x4bb   :  { %6723 = vmatprep.subr.mxu0 %v7229_v2 }
 0x4bc   :  { %v1943_v58 = vpop.permute.xlu1 %1942 }
 0x4bd   :  { %6721 = vmatmul.mubr.msk.f32.vlgmr.msra.gmra.mrb[22].mxu0 %vm305_vm2, %v1709_v45  ;;  %v1945_v52 = vpop.permute.xlu0 %1944 }
 0x4be   :  { %6724 = vmatpush3.xpose.msk.msra.mxu0 %vm305_vm2, %v1789_v56  ;;  %6725 = vmatprep.mubr.msk.f32.mxu0 %vm7230_vm1, %v7229_v2 }
 0x4bf   :  { %6728 = vmatprep.subr.mxu0 %v7229_v2 }
 0x4c0   :  { %v2101_v59 = vpop.permute.xlu1 %2100 }
 0x4c1   :  { %6726 = vmatmul.mubr.msk.f32.vlgmr.msra.gmra.mrb[24].mxu0 %vm305_vm2, %v1787_v42  ;;  %v2023_v20 = vpop.permute.xlu0 %2022 }
 0x4c2   :  { %6729 = vmatpush3.xpose.msk.msra.mxu0 %vm305_vm2, %v1867_v43  ;;  %6730 = vmatprep.mubr.msk.f32.mxu0 %vm7230_vm1, %v7229_v2 }
 0x4c3   :  { %6733 = vmatprep.subr.mxu0 %v7229_v2 }
 0x4c4   :  { %v2099_v60 = vpop.permute.xlu1 %2098 }
 0x4c5   :  { %6731 = vmatmul.mubr.msk.f32.vlgmr.msra.gmra.mrb[26].mxu0 %vm305_vm2, %v1865_v55  ;;  %v2021_v40 = vpop.permute.xlu0 %2020 }
 0x4c6   :  { %6734 = vmatpush3.xpose.msk.msra.mxu0 %vm305_vm2, %v1945_v52  ;;  %6735 = vmatprep.mubr.msk.f32.mxu0 %vm7230_vm1, %v7229_v2 }
 0x4c7   :  { %6743 = vmatprep.subr.mxu0 %v7229_v2 }
 0x4c8   :  { %v2257_v63 = vpop.permute.xlu1 %2256 }
 0x4c9   :  { %6736 = vmatmul.mubr.msk.f32.vlgmr.msra.gmra.mrb[28].mxu0 %vm305_vm2, %v1943_v58  ;;  %v2179_v41 = vpop.permute.xlu0 %2178 }
 0x4ca   :  { %6744 = vmatpush3.xpose.msk.msra.mxu0 %vm305_vm2, %v2101_v59  ;;  %6745 = vmatprep.mubr.msk.f32.mxu0 %vm7230_vm1, %v7229_v2 }
 0x4cb   :  { %6753 = vmatprep.subr.mxu0 %v7229_v2 }
 0x4cc   :  { %v2255_v0 = vpop.permute.xlu1 %2254 }
 0x4cd   :  { %6746 = vmatmul.mubr.msk.f32.vlgmr.msra.gmra.mrb[30].mxu0 %vm305_vm2, %v2099_v60  ;;  %v2177_v33 = vpop.permute.xlu0 %2176 }
 0x4ce   :  { %6754 = vmatpush3.xpose.msk.msra.mxu0 %vm305_vm2, %v2257_v63  ;;  %6755 = vmatprep.mubr.msk.f32.mxu0 %vm7230_vm1, %v7229_v2 }
 0x4cf   :  { %6763 = vmatprep.subr.mxu0 %v7229_v2 }
 0x4d1   :  { %6756 = vmatmul.mubr.msk.f32.vlgmr.msra.gmra.mrb[32].mxu0 %vm305_vm2, %v2255_v0 }
 0x4d2   :  { %6765 = vmatprep.mubr.msk.f32.mxu0 %vm7230_vm1, %v7229_v2 }
 0x577   :  { %v1079_v4 = vpop.f32.mrb[10].mxu1 }
 0x578   :  { %v6672_v5 = vpop.f32.mrb[11].mxu1 }
 0x579   :  { %v1155_v6 = vpop.f32.mrb[14].mxu0 }
 0x57a   :  { %v1615_v7 = vpack.c.bf16 %v1155_v6, %v1079_v4  ;;  %v6677_v8 = vpop.f32.mrb[15].mxu0 }
 0x57c   :  { %6710 = vmatprep.mubr.msk.bf16.mxu1 %vm305_vm2, %v1615_v7 }
 0x57d   :  { %v1231_v10 = vpop.f32.mrb[12].mxu1 }
 0x57e   :  { %v6682_v12 = vpop.f32.mrb[13].mxu1 }
 0x581   :  { %v1307_v14 = vpop.f32.mrb[16].mxu0 }
 0x582   :  { %v1616_v16 = vpack.c.bf16 %v1307_v14, %v1231_v10  ;;  %v6687_v18 = vpop.f32.mrb[17].mxu0 }
 0x584   :  { %6711 = vmatmul.mubr.msk.bf16.vlgmr.msra.gmra.mrb[20].mxu1 %vm305_vm2, %v1616_v16 }
 0x585   :  { %6739 = vmatpush3.xpose.msk.msra.mxu1 %vm305_vm2, %v2023_v20  ;;  %v1459_v22 = vpop.f32.mrb[18].mxu0 }
 0x586   :  { %v1383_v26 = vpop.f32.mrb[14].mxu1  ;;  %v6697_v27 = vpop.f32.mrb[19].mxu0  ;;  %6748 = vmatprep.subr.mxu1 %v7229_v2 }
 0x587   :  { %v1617_v28 = vpack.c.bf16 %v1459_v22, %v1383_v26  ;;  %v6692_v29 = vpop.f32.mrb[15].mxu1 }
 0x589   :  { %6714 = vmatprep.mubr.msk.bf16.mxu1 %vm305_vm2, %v1617_v28  ;;  %v1611_v30 = vpop.f32.mrb[20].mxu0 }
 0x58a   :  { %v1535_v31 = vpop.f32.mrb[16].mxu1  ;;  %v6707_v24 = vpop.f32.mrb[21].mxu0 }
 0x58b   :  { %v1618_v34 = vpack.c.bf16 %v1611_v30, %v1535_v31  ;;  %v6702_v36 = vpop.f32.mrb[17].mxu1 }
 0x58d   :  { %6715 = vmatmul.mubr.msk.bf16.gmra.mrb[24].mxu1 %vm305_vm2, %v1618_v34 }
 0x58e   :  { %6740 = vmatprep.mubr.msk.f32.mxu1 %vm7230_vm1, %v7229_v2 }
 0x590   :  { %v1782_v39 = vpop.f32.mrb[22].mxu0 }
 0x591   :  { %v7627_v32 = vadd.f32 %v1782_v39, %v7463_v35  ;;  %v6722_v44 = vpop.f32.mrb[23].mxu0 }
 0x593   :  { %v2332_v45 = vsel %vm305_vm2, %v7627_v32, -inf }
 0x594   :  { %2333 = vmax.xlane.f32.xlu0 %v2332_v45  ;;  %v1860_v46 = vpop.f32.mrb[24].mxu0 }
 0x595   :  { %v1861_v47 = vadd.f32 %v1860_v46, %v7463_v35  ;;  %v6727_v49 = vpop.f32.mrb[25].mxu0  ;;  %6741 = vmatmul.mubr.msk.f32.vlgmr.msra.gmra.mrb[18].mxu1 %vm305_vm2, %v2021_v40 }
 0x596   :  { %6749 = vmatpush3.xpose.msk.msra.mxu1 %vm305_vm2, %v2179_v41  ;;  %6750 = vmatprep.mubr.msk.f32.mxu1 %vm7230_vm1, %v7229_v2 }
 0x597   :  { %v2335_v50 = vsel %vm305_vm2, %v1861_v47, -inf  ;;  %6758 = vmatprep.subr.mxu1 %v7229_v2 }
 0x598   :  { %2336 = vmax.xlane.f32.xlu1 %v2335_v50  ;;  %v1938_v42 = vpop.f32.mrb[26].mxu0 }
 0x599   :  { %v1939_v51 = vadd.f32 %v1938_v42, %v7463_v35  ;;  %v6732_v54 = vpop.f32.mrb[27].mxu0  ;;  %6751 = vmatmul.mubr.msk.f32.vlgmr.msra.gmra.mrb[28].mxu1 %vm305_vm2, %v2177_v33 }
 0x59a   :  { %6760 = vmatprep.mubr.msk.f32.mxu1 %vm7230_vm1, %v7229_v2 }
 0x59b   :  { %v2338_v55 = vsel %vm305_vm2, %v1939_v51, -inf }
 0x59c   :  { %2339 = vmax.xlane.f32.xlu0 %v2338_v55  ;;  %v2016_v56 = vpop.f32.mrb[28].mxu0 }
 0x59d   :  { %v2017_v58 = vadd.f32 %v2016_v56, %v7463_v35  ;;  %v6737_v43 = vpop.f32.mrb[29].mxu0 }
 0x59f   :  { %v2341_v59 = vsel %vm305_vm2, %v2017_v58, -inf }
 0x5a0   :  { %2342 = vmax.xlane.f32.xlu0 %v2341_v59  ;;  %v2172_v60 = vpop.f32.mrb[30].mxu0 }
 0x5a1   :  { %v2173_v52 = vadd.f32 %v2172_v60, %v7463_v35  ;;  %v6747_v63 = vpop.f32.mrb[31].mxu0 }
 0x5a3   :  { %v2347_v0 = vsel %vm305_vm2, %v2173_v52, -inf }
 0x5a4   :  { %2348 = vmax.xlane.f32.xlu1 %v2347_v0  ;;  %v2328_v53 = vpop.f32.mrb[32].mxu0 }
 0x5a5   :  { %v2329_v3 = vadd.f32 %v2328_v53, %v7463_v35  ;;  %v6757_v4 = vpop.f32.mrb[33].mxu0 }
 0x5a7   :  { %v2353_v5 = vsel %vm305_vm2, %v2329_v3, -inf }
 0x5a8   :  { %2354 = vmax.xlane.f32.xlu1 %v2353_v5 }
 0x621   :  { %v2334_v6 = vpop.xlane.xlu0 %2333 }
 0x622   :  { %v2356_v41 = vsub.f32 %v7627_v32, %v2334_v6 }
 0x624   :  { %v2364_v45 = vmul.f32 1.442695, %v2356_v41 }
 0x625   :  { %v2337_v7 = vpop.xlane.xlu1 %2336 }
 0x626   :  { %v2357_v8 = vsub.f32 %v1861_v47, %v2337_v7 }
 0x628   :  { %v2366_v10 = vmul.f32 1.442695, %v2357_v8 }
 0x629   :  { %v2340_v12 = vpop.xlane.xlu0 %2339 }
 0x62a   :  { %7115 = vpow2.f32 %v2366_v10  ;;  %v2358_v46 = vsub.f32 %v1939_v51, %v2340_v12 }
 0x62c   :  { %v2368_v47 = vmul.f32 1.442695, %v2358_v46 }
 0x62d   :  { %v2343_v14 = vpop.xlane.xlu0 %2342 }
 0x62e   :  { %v2359_v16 = vsub.f32 %v2017_v58, %v2343_v14 }
 0x630   :  { %v2370_v18 = vmul.f32 1.442695, %v2359_v16 }
 0x631   :  { %v2349_v20 = vpop.xlane.xlu1 %2348 }
 0x632   :  { %7117 = vpow2.f32 %v2370_v18  ;;  %v2361_v22 = vsub.f32 %v2173_v52, %v2349_v20 }
 0x634   :  { %v7649_v26 = vpop.eup %7115  ;;  %v2374_v27 = vmul.f32 1.442695, %v2361_v22 }
 0x635   :  { %v2355_v28 = vpop.xlane.xlu1 %2354  ;;  %v2383_v29 = vsel %vm305_vm2, %v7649_v26, 0.0 }
 0x636   :  { %7119 = vpow2.f32 %v2374_v27  ;;  %v2363_v30 = vsub.f32 %v2329_v3, %v2355_v28  ;;  %2384 = vadd.xlane.f32.xlu1 %v2383_v29 }
 0x638   :  { %v2378_v31 = vmul.f32 1.442695, %v2363_v30 }
 0x63a   :  { %7121 = vpow2.f32 %v2378_v31 }
 0x63b   :  { %7123 = vpow2.f32 %v2364_v45 }
 0x63c   :  { %v7653_v24 = vpop.eup %7117  ;;  %7125 = vpow2.f32 %v2368_v47 }
 0x63d   :  { %v2389_v34 = vsel %vm305_vm2, %v7653_v24, 0.0 }
 0x63e   :  { %2390 = vadd.xlane.f32.xlu1 %v2389_v34 }
 0x640   :  { %v7657_v36 = vpop.eup %7119 }
 0x641   :  { %v2395_v40 = vsel %vm305_vm2, %v7657_v36, 0.0 }
 0x642   :  { %2396 = vadd.xlane.f32.xlu1 %v2395_v40 }
 0x644   :  { %v7661_v39 = vpop.eup %7121 }
 0x645   :  { %v2401_v44 = vsel %vm305_vm2, %v7661_v39, 0.0  ;;  %v7690_v56 = vpop.eup %7123 }
 0x646   :  { %2402 = vadd.xlane.f32.xlu1 %v2401_v44  ;;  %v2380_v58 = vsel %vm305_vm2, %v7690_v56, 0.0  ;;  %v7696_v43 = vpop.eup %7125 }
 0x657   :  { %2496 = vrot.lane.b32.xlu1 %v7394_v15, %s7235_s19 }
 0x65b   :  { %2572 = vrot.lane.b32.xlu1 %v7388_v9, %s7235_s19 }
 0x65f   :  { %2648 = vrot.lane.b32.xlu1 %v7392_v13, %s7235_s19 }
 0x663   :  { %2800 = vrot.lane.b32.xlu1 %v7405_v23, %s7235_s19 }
 0x667   :  { %2952 = vrot.lane.b32.xlu1 %v7403_v21, %s7235_s19 }
 0x668   :  { %v2094_v49 = vpop.f32.mrb[18].mxu1 }
 0x669   :  { %v7677_v50 = vadd.f32 %v2094_v49, %v7463_v35  ;;  %v6742_v33 = vpop.f32.mrb[19].mxu1 }
 0x66b   :  { %3120 = vrot.lane.b32.xlu1 %v7390_v11, %s7236_s20  ;;  %v2344_v32 = vsel %vm305_vm2, %v7677_v50, -inf }
 0x66c   :  { %2345 = vmax.xlane.f32.xlu0 %v2344_v32  ;;  %v2250_v42 = vpop.f32.mrb[28].mxu1 }
 0x66d   :  { %v7684_v51 = vadd.f32 %v2250_v42, %v7463_v35  ;;  %v6752_v54 = vpop.f32.mrb[29].mxu1  ;;  %v2386_v35 = vsel %vm305_vm2, %v7696_v43, 0.0 }
 0x66f   :  { %3198 = vrot.lane.b32.xlu1 %v7394_v15, %s7236_s20  ;;  %v2350_v55 = vsel %vm305_vm2, %v7684_v51, -inf }
 0x670   :  { %2351 = vmax.xlane.f32.xlu0 %v2350_v55 }
 0x673   :  { %3276 = vrot.lane.b32.xlu1 %v7388_v9, %s7236_s20 }
 0x674   :  { %2381 = vadd.xlane.f32.xlu0 %v2380_v58 }
 0x677   :  { %3354 = vrot.lane.b32.xlu1 %v7392_v13, %s7236_s20 }
 0x678   :  { %2387 = vadd.xlane.f32.xlu0 %v2386_v35 }
 0x67b   :  { %3512 = vrot.lane.b32.xlu1 %v7405_v23, %s7237_s21 }
 0x67f   :  { %3510 = vrot.lane.b32.xlu1 %v7405_v23, %s7236_s20 }
 0x683   :  { %3668 = vrot.lane.b32.xlu1 %v7403_v21, %s7237_s21 }
 0x687   :  { %3666 = vrot.lane.b32.xlu1 %v7403_v21, %s7236_s20 }
 0x68e   :  { %2420 = vrot.lane.b32.xlu0 %v7390_v11, %s7235_s19 }
 0x692   :  { %2724 = vrot.lane.b32.xlu0 %v7401_v19, %s7235_s19 }
 0x6c3   :  { %v2385_v59 = vpop.xlane.xlu1 %2384 }
 0x6c4   :  { %7127 = vrcp.f32 %v2385_v59 }
 0x6cb   :  { %v2391_v60 = vpop.xlane.xlu1 %2390 }
 0x6cc   :  { %7129 = vrcp.f32 %v2391_v60 }
 0x6ce   :  { %v7128_v0 = vpop.eup %7127 }
 0x6cf   :  { %v2397_v52 = vpop.xlane.xlu1 %2396  ;;  %v2413_v3 = vmul.f32 %v7128_v0, %v7649_v26 }
 0x6d0   :  { %7131 = vrcp.f32 %v2397_v52 }
 0x6d3   :  { %v2403_v63 = vpop.xlane.xlu1 %2402 }
 0x6d4   :  { %7133 = vrcp.f32 %v2403_v63 }
 0x6d6   :  { %v7130_v5 = vpop.eup %7129 }
 0x6d7   :  { %v2497_v53 = vpop.permute.xlu1 %2496  ;;  %v2415_v7 = vmul.f32 %v7130_v5, %v7653_v24 }
 0x6d8   :  { %6764 = vmatpush3.msra.mxu0 %v2497_v53 }
 0x6d9   :  { %6766 = vmatmul.mubr.msk.f32.vlgmr.msra.gmra.mrb[34].mxu0 %vm305_vm2, %v2413_v3  ;;  %6773 = vmatprep.subr.mxu0 %v7229_v2 }
 0x6da   :  { %6775 = vmatprep.mubr.msk.f32.mxu0 %vm7230_vm1, %v7229_v2  ;;  %v7132_v8 = vpop.eup %7131 }
 0x6db   :  { %v2573_v4 = vpop.permute.xlu1 %2572  ;;  %v2417_v12 = vmul.f32 %v7132_v8, %v7657_v36 }
 0x6de   :  { %v7134_v14 = vpop.eup %7133 }
 0x6df   :  { %v2649_v6 = vpop.permute.xlu1 %2648  ;;  %v2419_v18 = vmul.f32 %v7134_v14, %v7661_v39 }
 0x6e0   :  { %6774 = vmatpush3.msra.mxu0 %v2649_v6 }
 0x6e1   :  { %6776 = vmatmul.mubr.msk.f32.vlgmr.msra.gmra.mrb[36].mxu0 %vm305_vm2, %v2415_v7  ;;  %6783 = vmatprep.subr.mxu0 %v7229_v2 }
 0x6e2   :  { %6785 = vmatprep.mubr.msk.f32.mxu0 %vm7230_vm1, %v7229_v2 }
 0x6e3   :  { %v2801_v10 = vpop.permute.xlu1 %2800 }
 0x6e4   :  { %6784 = vmatpush3.msra.mxu0 %v2801_v10 }
 0x6e5   :  { %6786 = vmatmul.mubr.msk.f32.vlgmr.msra.gmra.mrb[38].mxu0 %vm305_vm2, %v2417_v12  ;;  %6793 = vmatprep.subr.mxu0 %v7229_v2 }
 0x6e6   :  { %6795 = vmatprep.mubr.msk.f32.mxu0 %vm7230_vm1, %v7229_v2 }
 0x6e7   :  { %v2953_v16 = vpop.permute.xlu1 %2952 }
 0x6e8   :  { %6794 = vmatpush3.msra.mxu0 %v2953_v16 }
 0x6e9   :  { %6796 = vmatmul.mubr.msk.f32.vlgmr.msra.gmra.mrb[40].mxu0 %vm305_vm2, %v2419_v18  ;;  %6808 = vmatprep.subr.mxu0 %v7229_v2 }
 0x6ea   :  { %6810 = vmatprep.mubr.msk.f32.mxu0 %vm7230_vm1, %v7229_v2 }
 0x6eb   :  { %v3121_v49 = vpop.permute.xlu1 %3120 }
 0x6f9   :  { %v2346_v20 = vpop.xlane.xlu0 %2345 }
 0x6fa   :  { %v2360_v22 = vsub.f32 %v7677_v50, %v2346_v20  ;;  %v3199_v50 = vpop.permute.xlu1 %3198 }
 0x6fc   :  { %v2372_v26 = vmul.f32 1.442695, %v2360_v22 }
 0x6fd   :  { %v2352_v27 = vpop.xlane.xlu0 %2351 }
 0x6fe   :  { %7135 = vpow2.f32 %v2372_v26  ;;  %v2362_v28 = vsub.f32 %v7684_v51, %v2352_v27  ;;  %v3277_v42 = vpop.permute.xlu1 %3276 }
 0x700   :  { %v2376_v29 = vmul.f32 1.442695, %v2362_v28 }
 0x701   :  { %v2382_v30 = vpop.xlane.xlu0 %2381 }
 0x702   :  { %7137 = vpow2.f32 %v2376_v29  ;;  %v3355_v55 = vpop.permute.xlu1 %3354 }
 0x703   :  { %7139 = vrcp.f32 %v2382_v30 }
 0x705   :  { %v2388_v31 = vpop.xlane.xlu0 %2387 }
 0x706   :  { %7141 = vrcp.f32 %v2388_v31  ;;  %v3513_v63 = vpop.permute.xlu1 %3512 }
 0x708   :  { %v7136_v24 = vpop.eup %7135 }
 0x709   :  { %v2421_v34 = vpop.permute.xlu0 %2420  ;;  %v2392_v36 = vsel %vm305_vm2, %v7136_v24, 0.0 }
 0x70a   :  { %2393 = vadd.xlane.f32.xlu0 %v2392_v36  ;;  %6759 = vmatpush3.msra.mxu1 %v2421_v34 }
 0x70b   :  { %6768 = vmatprep.subr.mxu1 %v7229_v2 }
 0x70c   :  { %v7138_v40 = vpop.eup %7137 }
 0x70d   :  { %v7140_v39 = vpop.eup %7139  ;;  %v2398_v44 = vsel %vm305_vm2, %v7138_v40, 0.0  ;;  %v2725_v47 = vpop.permute.xlu0 %2724 }
 0x70e   :  { %2399 = vadd.xlane.f32.xlu0 %v2398_v44  ;;  %v2412_v41 = vmul.f32 %v7140_v39, %v7690_v56 }
 0x710   :  { %v7142_v45 = vpop.eup %7141  ;;  %6761 = vmatmul.mubr.msk.f32.vlgmr.msra.gmra.mrb[30].mxu1 %vm305_vm2, %v2412_v41 }
 0x711   :  { %6769 = vmatpush3.msra.mxu1 %v2573_v4  ;;  %6770 = vmatprep.mubr.msk.f32.mxu1 %vm7230_vm1, %v7229_v2  ;;  %v2414_v46 = vmul.f32 %v7142_v45, %v7696_v43  ;;  %v51_v43 = vld [vmem:[%s8275_s2 + $0x4] sm:$0xf]  ;;  %v3511_v4 = vpop.permute.xlu1 %3510 }
 0x712   :  { %6778 = vmatprep.subr.mxu1 %v7229_v2  ;;  %v3045_v52 = vsel %vm1631_vm3, %v51_v43, 0 }
 0x714   :  { %6771 = vmatmul.mubr.msk.f32.vlgmr.msra.gmra.mrb[32].mxu1 %vm305_vm2, %v2414_v46 }
 0x715   :  { %6779 = vmatpush3.msra.mxu1 %v2725_v47  ;;  %6780 = vmatprep.mubr.msk.f32.mxu1 %vm7230_vm1, %v7229_v2  ;;  %v3669_v6 = vpop.permute.xlu1 %3668 }
 0x716   :  { %6788 = vmatprep.subr.mxu1 %v7229_v2 }
 0x719   :  { %v3667_v14 = vpop.permute.xlu1 %3666 }
 0x724   :  { %2876 = vrot.lane.b32.xlu0 %v7399_v17, %s7235_s19 }
 0x728   :  { %3122 = vrot.lane.b32.xlu0 %v7390_v11, %s7237_s21 }
 0x72c   :  { %3200 = vrot.lane.b32.xlu0 %v7394_v15, %s7237_s21 }
 0x730   :  { %3278 = vrot.lane.b32.xlu0 %v7388_v9, %s7237_s21 }
 0x734   :  { %3356 = vrot.lane.b32.xlu0 %v7392_v13, %s7237_s21 }
 0x738   :  { %3434 = vrot.lane.b32.xlu0 %v7401_v19, %s7237_s21 }
 0x73c   :  { %3432 = vrot.lane.b32.xlu0 %v7401_v19, %s7236_s20 }
 0x740   :  { %3590 = vrot.lane.b32.xlu0 %v7399_v17, %s7237_s21 }
 0x744   :  { %3588 = vrot.lane.b32.xlu0 %v7399_v17, %s7236_s20 }
 0x797   :  { %v2394_v33 = vpop.xlane.xlu0 %2393 }
 0x798   :  { %7143 = vrcp.f32 %v2394_v33 }
 0x79b   :  { %v2400_v32 = vpop.xlane.xlu0 %2399 }
 0x79c   :  { %7145 = vrcp.f32 %v2400_v32 }
 0x79f   :  { %v2877_v51 = vpop.permute.xlu0 %2876 }
 0x7a2   :  { %v7144_v54 = vpop.eup %7143 }
 0x7a3   :  { %v3123_v56 = vpop.permute.xlu0 %3122  ;;  %v2416_v58 = vmul.f32 %v7144_v54, %v7136_v24 }
 0x7a4   :  { %6809 = vmatpush3.xpose.msk.msra.mxu0 %vm305_vm2, %v3123_v56 }
 0x7a5   :  { %6781 = vmatmul.mubr.msk.f32.vlgmr.msra.gmra.mrb[34].mxu1 %vm305_vm2, %v2416_v58  ;;  %6813 = vmatprep.subr.mxu0 %v7229_v2 }
 0x7a6   :  { %v7146_v35 = vpop.eup %7145  ;;  %6789 = vmatpush3.msra.mxu1 %v2877_v51  ;;  %6790 = vmatprep.mubr.msk.f32.mxu1 %vm7230_vm1, %v7229_v2 }
 0x7a7   :  { %6811 = vmatmul.mubr.msk.f32.vlgmr.msra.gmra.mrb[42].mxu0 %vm305_vm2, %v3121_v49  ;;  %v3201_v59 = vpop.permute.xlu0 %3200  ;;  %v2418_v60 = vmul.f32 %v7146_v35, %v7138_v40  ;;  %7045 = vmatprep.subr.msk.bf16.mxu1 %vm1631_vm3, %v51_v43  ;;  %v7814_v40 = vld [vmem:[%s8274_s4] sm:$0xff]  ;;  %s7238_s4 = smov 48  }
 0x7a8   :  { %6814 = vmatpush3.xpose.msk.msra.mxu0 %vm305_vm2, %v3201_v59  ;;  %6815 = vmatprep.mubr.msk.f32.mxu0 %vm7230_vm1, %v7229_v2 }
 0x7a9   :  { %6791 = vmatmul.mubr.msk.f32.vlgmr.msra.gmra.mrb[36].mxu1 %vm305_vm2, %v2418_v60  ;;  %6818 = vmatprep.subr.mxu0 %v7229_v2 }
 0x7aa   :  { %6799 = vmatpush3.bf16.msra.mxu1 %v3045_v52 }
 0x7ab   :  { %6816 = vmatmul.mubr.msk.f32.vlgmr.msra.gmra.mrb[44].mxu0 %vm305_vm2, %v3199_v50  ;;  %v3279_v0 = vpop.permute.xlu0 %3278  ;;  %6828 = vmatprep.subr.mxu1 %v7229_v2 }
 0x7ac   :  { %v2568_v53 = vpop.f32.mrb[34].mxu0  ;;  %6819 = vmatpush3.xpose.msk.msra.mxu0 %vm305_vm2, %v3279_v0  ;;  %6820 = vmatprep.mubr.msk.f32.mxu0 %vm7230_vm1, %v7229_v2 }
 0x7ad   :  { %v6767_v3 = vpop.f32.mrb[35].mxu0  ;;  %6823 = vmatprep.subr.mxu0 %v7229_v2 }
 0x7af   :  { %6821 = vmatmul.mubr.msk.f32.vlgmr.msra.gmra.mrb[46].mxu0 %vm305_vm2, %v3277_v42  ;;  %v3357_v5 = vpop.permute.xlu0 %3356 }
 0x7b0   :  { %6824 = vmatpush3.xpose.msk.msra.mxu0 %vm305_vm2, %v3357_v5  ;;  %6825 = vmatprep.mubr.msk.f32.mxu0 %vm7230_vm1, %v7229_v2 }
 0x7b1   :  { %6833 = vmatprep.subr.mxu0 %v7229_v2 }
 0x7b3   :  { %6826 = vmatmul.mubr.msk.f32.vlgmr.msra.gmra.mrb[48].mxu0 %vm305_vm2, %v3355_v55  ;;  %v3435_v30 = vpop.permute.xlu0 %3434 }
 0x7b4   :  { %v2720_v7 = vpop.f32.mrb[36].mxu0  ;;  %6834 = vmatpush3.xpose.msk.msra.mxu0 %vm305_vm2, %v3513_v63  ;;  %6835 = vmatprep.mubr.msk.f32.mxu0 %vm7230_vm1, %v7229_v2 }
 0x7b5   :  { %v6777_v8 = vpop.f32.mrb[37].mxu0  ;;  %6843 = vmatprep.subr.mxu0 %v7229_v2 }
 0x7b7   :  { %6836 = vmatmul.mubr.msk.f32.vlgmr.msra.gmra.mrb[50].mxu0 %vm305_vm2, %v3511_v4  ;;  %v3433_v49 = vpop.permute.xlu0 %3432 }
 0x7b8   :  { %v2872_v10 = vpop.f32.mrb[38].mxu0  ;;  %6844 = vmatpush3.xpose.msk.msra.mxu0 %vm305_vm2, %v3669_v6  ;;  %6845 = vmatprep.mubr.msk.f32.mxu0 %vm7230_vm1, %v7229_v2 }
 0x7b9   :  { %v6787_v12 = vpop.f32.mrb[39].mxu0  ;;  %6853 = vmatprep.subr.mxu0 %v7229_v2 }
 0x7bb   :  { %6846 = vmatmul.mubr.msk.f32.vlgmr.msra.gmra.mrb[52].mxu0 %vm305_vm2, %v3667_v14  ;;  %v3591_v56 = vpop.permute.xlu0 %3590 }
 0x7bc   :  { %v3024_v16 = vpop.f32.mrb[40].mxu0  ;;  %6855 = vmatprep.mubr.msk.f32.mxu0 %vm7230_vm1, %v7229_v2 }
 0x7bd   :  { %v6797_v18 = vpop.f32.mrb[41].mxu0 }
 0x7bf   :  { %v3589_v52 = vpop.permute.xlu0 %3588 }
 0x7e3   :  { %v2492_v20 = vpop.f32.mrb[30].mxu1 }
 0x7e4   :  { %v3028_v22 = vpack.c.bf16 %v2568_v53, %v2492_v20  ;;  %v6762_v26 = vpop.f32.mrb[31].mxu1 }
 0x7e6   :  { %6800 = vmatprep.mubr.msk.bf16.mxu1 %vm305_vm2, %v3028_v22 }
 0x7e7   :  { %v2644_v27 = vpop.f32.mrb[32].mxu1 }
 0x7e8   :  { %v3029_v28 = vpack.c.bf16 %v2720_v7, %v2644_v27  ;;  %v6772_v29 = vpop.f32.mrb[33].mxu1 }
 0x7ea   :  { %6801 = vmatmul.mubr.msk.bf16.vlgmr.msra.gmra.mrb[20].mxu1 %vm305_vm2, %v3029_v28 }
 0x7eb   :  { %6829 = vmatpush3.xpose.msk.msra.mxu1 %vm305_vm2, %v3435_v30 }
 0x7ec   :  { %6838 = vmatprep.subr.mxu1 %v7229_v2 }
 0x878   :  { %v2796_v31 = vpop.f32.mrb[34].mxu1 }
 0x879   :  { %v3030_v24 = vpack.c.bf16 %v2872_v10, %v2796_v31  ;;  %v6782_v34 = vpop.f32.mrb[35].mxu1 }
 0x87a   :  { %v3194_v36 = vpop.f32.mrb[42].mxu0 }
 0x87b   :  { %v7817_v39 = vadd.f32 %v7814_v40, %v3194_v36  ;;  %6804 = vmatprep.mubr.msk.bf16.mxu1 %vm305_vm2, %v3030_v24  ;;  %v6812_v44 = vpop.f32.mrb[43].mxu0 }
 0x87c   :  { %v2948_v41 = vpop.f32.mrb[36].mxu1 }
 0x87d   :  { %v3031_v45 = vpack.c.bf16 %v3024_v16, %v2948_v41  ;;  %v6792_v46 = vpop.f32.mrb[37].mxu1  ;;  %v3744_v47 = vsel %vm305_vm2, %v7817_v39, -inf }
 0x87e   :  { %3745 = vmax.xlane.f32.xlu0 %v3744_v47  ;;  %v3272_v50 = vpop.f32.mrb[44].mxu0 }
 0x87f   :  { %v3273_v33 = vadd.f32 %v7814_v40, %v3272_v50  ;;  %6805 = vmatmul.mubr.msk.bf16.gmra.mrb[24].mxu1 %vm305_vm2, %v3031_v45  ;;  %v6817_v32 = vpop.f32.mrb[45].mxu0 }
 0x880   :  { %6830 = vmatprep.mubr.msk.f32.mxu1 %vm7230_vm1, %v7229_v2 }
 0x881   :  { %v3747_v42 = vsel %vm305_vm2, %v3273_v33, -inf }
 0x882   :  { %3748 = vmax.xlane.f32.xlu1 %v3747_v42  ;;  %v3350_v51 = vpop.f32.mrb[46].mxu0 }
 0x883   :  { %v7828_v54 = vadd.f32 %v7814_v40, %v3350_v51  ;;  %v6822_v55 = vpop.f32.mrb[47].mxu0 }
 0x885   :  { %v3750_v58 = vsel %vm305_vm2, %v7828_v54, -inf }
 0x886   :  { %3751 = vmax.xlane.f32.xlu0 %v3750_v58  ;;  %v3428_v43 = vpop.f32.mrb[48].mxu0 }
 0x887   :  { %v3429_v35 = vadd.f32 %v7814_v40, %v3428_v43  ;;  %v6827_v59 = vpop.f32.mrb[49].mxu0  ;;  %6831 = vmatmul.mubr.msk.f32.vlgmr.msra.gmra.mrb[38].mxu1 %vm305_vm2, %v3433_v49 }
 0x888   :  { %6839 = vmatpush3.xpose.msk.msra.mxu1 %vm305_vm2, %v3591_v56  ;;  %6840 = vmatprep.mubr.msk.f32.mxu1 %vm7230_vm1, %v7229_v2 }
 0x889   :  { %v3753_v60 = vsel %vm305_vm2, %v3429_v35, -inf  ;;  %6848 = vmatprep.subr.mxu1 %v7229_v2 }
 0x88a   :  { %3754 = vmax.xlane.f32.xlu0 %v3753_v60  ;;  %v3584_v63 = vpop.f32.mrb[50].mxu0 }
 0x88b   :  { %v3585_v0 = vadd.f32 %v7814_v40, %v3584_v63  ;;  %v6837_v53 = vpop.f32.mrb[51].mxu0  ;;  %6841 = vmatmul.mubr.msk.f32.vlgmr.msra.gmra.mrb[40].mxu1 %vm305_vm2, %v3589_v52 }
 0x88c   :  { %6850 = vmatprep.mubr.msk.f32.mxu1 %vm7230_vm1, %v7229_v2 }
 0x88d   :  { %v3759_v3 = vsel %vm305_vm2, %v3585_v0, -inf }
 0x88e   :  { %3760 = vmax.xlane.f32.xlu1 %v3759_v3  ;;  %v3740_v4 = vpop.f32.mrb[52].mxu0 }
 0x88f   :  { %v3741_v5 = vadd.f32 %v7814_v40, %v3740_v4  ;;  %v6847_v6 = vpop.f32.mrb[53].mxu0 }
 0x891   :  { %v3765_v7 = vsel %vm305_vm2, %v3741_v5, -inf }
 0x892   :  { %3766 = vmax.xlane.f32.xlu1 %v3765_v7 }
 0x90b   :  { %v3746_v8 = vpop.xlane.xlu0 %3745 }
 0x90c   :  { %v3768_v49 = vsub.f32 %v7817_v39, %v3746_v8 }
 0x90e   :  { %v3776_v50 = vmul.f32 1.442695, %v3768_v49 }
 0x90f   :  { %v3749_v10 = vpop.xlane.xlu1 %3748 }
 0x910   :  { %v3769_v12 = vsub.f32 %v3273_v33, %v3749_v10 }
 0x912   :  { %v3778_v14 = vmul.f32 1.442695, %v3769_v12 }
 0x913   :  { %v3752_v16 = vpop.xlane.xlu0 %3751 }
 0x914   :  { %7147 = vpow2.f32 %v3778_v14  ;;  %v3770_v33 = vsub.f32 %v7828_v54, %v3752_v16 }
 0x916   :  { %v3780_v32 = vmul.f32 1.442695, %v3770_v33 }
 0x917   :  { %v3755_v18 = vpop.xlane.xlu0 %3754 }
 0x918   :  { %v3771_v20 = vsub.f32 %v3429_v35, %v3755_v18 }
 0x91a   :  { %v3782_v22 = vmul.f32 1.442695, %v3771_v20 }
 0x91b   :  { %v3761_v26 = vpop.xlane.xlu1 %3760 }
 0x91c   :  { %7149 = vpow2.f32 %v3782_v22  ;;  %v3773_v27 = vsub.f32 %v3585_v0, %v3761_v26 }
 0x91e   :  { %v7846_v28 = vpop.eup %7147  ;;  %v3786_v29 = vmul.f32 1.442695, %v3773_v27 }
 0x91f   :  { %v3767_v30 = vpop.xlane.xlu1 %3766  ;;  %v3795_v31 = vsel %vm305_vm2, %v7846_v28, 0.0 }
 0x920   :  { %7151 = vpow2.f32 %v3786_v29  ;;  %v3775_v24 = vsub.f32 %v3741_v5, %v3767_v30  ;;  %3796 = vadd.xlane.f32.xlu1 %v3795_v31 }
 0x922   :  { %v3790_v34 = vmul.f32 1.442695, %v3775_v24 }
 0x924   :  { %7153 = vpow2.f32 %v3790_v34 }
 0x925   :  { %7155 = vpow2.f32 %v3776_v50 }
 0x926   :  { %v7850_v36 = vpop.eup %7149  ;;  %7157 = vpow2.f32 %v3780_v32 }
 0x927   :  { %v3801_v44 = vsel %vm305_vm2, %v7850_v36, 0.0 }
 0x928   :  { %3802 = vadd.xlane.f32.xlu1 %v3801_v44 }
 0x92a   :  { %v7854_v41 = vpop.eup %7151 }
 0x92b   :  { %v3807_v45 = vsel %vm305_vm2, %v7854_v41, 0.0 }
 0x92c   :  { %3808 = vadd.xlane.f32.xlu1 %v3807_v45 }
 0x92e   :  { %v7858_v46 = vpop.eup %7153 }
 0x92f   :  { %v3813_v47 = vsel %vm305_vm2, %v7858_v46, 0.0  ;;  %v7889_v35 = vpop.eup %7155 }
 0x930   :  { %3814 = vadd.xlane.f32.xlu1 %v3813_v47  ;;  %v3792_v59 = vsel %vm305_vm2, %v7889_v35, 0.0  ;;  %v7895_v60 = vpop.eup %7157 }
 0x931   :  { %v3798_v52 = vsel %vm305_vm2, %v7895_v60, 0.0 }
 0x941   :  { %3908 = vrot.lane.b32.xlu1 %v7394_v15, %s7238_s4 }
 0x945   :  { %3984 = vrot.lane.b32.xlu1 %v7388_v9, %s7238_s4 }
 0x949   :  { %4060 = vrot.lane.b32.xlu1 %v7392_v13, %s7238_s4 }
 0x94d   :  { %4212 = vrot.lane.b32.xlu1 %v7405_v23, %s7238_s4 }
 0x951   :  { %4364 = vrot.lane.b32.xlu1 %v7403_v21, %s7238_s4 }
 0x955   :  { %4532 = vrot.lane.b32.xlu1 %v7390_v11, %s7239_s0 }
 0x959   :  { %4610 = vrot.lane.b32.xlu1 %v7394_v15, %s7239_s0 }
 0x95a   :  { %v3506_v42 = vpop.f32.mrb[38].mxu1 }
 0x95b   :  { %v7879_v51 = vadd.f32 %v7814_v40, %v3506_v42  ;;  %v6832_v39 = vpop.f32.mrb[39].mxu1 }
 0x95d   :  { %4688 = vrot.lane.b32.xlu1 %v7388_v9, %s7239_s0  ;;  %v3756_v54 = vsel %vm305_vm2, %v7879_v51, -inf }
 0x95e   :  { %3757 = vmax.xlane.f32.xlu0 %v3756_v54  ;;  %v3662_v55 = vpop.f32.mrb[40].mxu1 }
 0x95f   :  { %v3663_v56 = vadd.f32 %v7814_v40, %v3662_v55  ;;  %v6842_v58 = vpop.f32.mrb[41].mxu1 }
 0x961   :  { %4766 = vrot.lane.b32.xlu1 %v7392_v13, %s7239_s0  ;;  %v3762_v43 = vsel %vm305_vm2, %v3663_v56, -inf }
 0x962   :  { %3763 = vmax.xlane.f32.xlu0 %v3762_v43 }
 0x965   :  { %4924 = vrot.lane.b32.xlu1 %v7405_v23, %s7240_s26 }
 0x966   :  { %3793 = vadd.xlane.f32.xlu0 %v3792_v59 }
 0x969   :  { %4922 = vrot.lane.b32.xlu1 %v7405_v23, %s7239_s0 }
 0x96a   :  { %3799 = vadd.xlane.f32.xlu0 %v3798_v52 }
 0x96d   :  { %5080 = vrot.lane.b32.xlu1 %v7403_v21, %s7240_s26 }
 0x971   :  { %5078 = vrot.lane.b32.xlu1 %v7403_v21, %s7239_s0 }
 0x980   :  { %3832 = vrot.lane.b32.xlu0 %v7390_v11, %s7238_s4 }
 0x984   :  { %4136 = vrot.lane.b32.xlu0 %v7401_v19, %s7238_s4 }
 0x9ad   :  { %v3797_v63 = vpop.xlane.xlu1 %3796 }
 0x9ae   :  { %7159 = vrcp.f32 %v3797_v63  ;;  %v52_v63 = vld [vmem:[%s8275_s2 + $0x8] sm:$0xf] }
 0x9b5   :  { %v3803_v0 = vpop.xlane.xlu1 %3802 }
 0x9b6   :  { %7161 = vrcp.f32 %v3803_v0 }
 0x9b8   :  { %v7160_v4 = vpop.eup %7159 }
 0x9b9   :  { %v3809_v53 = vpop.xlane.xlu1 %3808  ;;  %v3825_v5 = vmul.f32 %v7160_v4, %v7846_v28 }
 0x9ba   :  { %7163 = vrcp.f32 %v3809_v53 }
 0x9bd   :  { %v3815_v3 = vpop.xlane.xlu1 %3814 }
 0x9be   :  { %7165 = vrcp.f32 %v3815_v3 }
 0x9c0   :  { %v7162_v8 = vpop.eup %7161 }
 0x9c1   :  { %v3909_v6 = vpop.permute.xlu1 %3908  ;;  %v3827_v10 = vmul.f32 %v7162_v8, %v7850_v36 }
 0x9c2   :  { %6854 = vmatpush3.msra.mxu0 %v3909_v6 }
 0x9c3   :  { %6856 = vmatmul.mubr.msk.f32.vlgmr.msra.gmra.mrb[54].mxu0 %vm305_vm2, %v3825_v5  ;;  %6863 = vmatprep.subr.mxu0 %v7229_v2  ;;  %v4457_v5 = vsel %vm1631_vm3, %v52_v63, 0 }
 0x9c4   :  { %6865 = vmatprep.mubr.msk.f32.mxu0 %vm7230_vm1, %v7229_v2  ;;  %v7164_v14 = vpop.eup %7163 }
 0x9c5   :  { %v3985_v7 = vpop.permute.xlu1 %3984  ;;  %v3829_v16 = vmul.f32 %v7164_v14, %v7854_v41 }
 0x9c8   :  { %v7166_v20 = vpop.eup %7165 }
 0x9c9   :  { %v4061_v12 = vpop.permute.xlu1 %4060  ;;  %v3831_v22 = vmul.f32 %v7166_v20, %v7858_v46 }
 0x9ca   :  { %6864 = vmatpush3.msra.mxu0 %v4061_v12 }
 0x9cb   :  { %6866 = vmatmul.mubr.msk.f32.vlgmr.msra.gmra.mrb[56].mxu0 %vm305_vm2, %v3827_v10  ;;  %6873 = vmatprep.subr.mxu0 %v7229_v2 }
 0x9cc   :  { %6875 = vmatprep.mubr.msk.f32.mxu0 %vm7230_vm1, %v7229_v2 }
 0x9cd   :  { %v4213_v18 = vpop.permute.xlu1 %4212 }
 0x9ce   :  { %6874 = vmatpush3.msra.mxu0 %v4213_v18 }
 0x9cf   :  { %6876 = vmatmul.mubr.msk.f32.vlgmr.msra.gmra.mrb[58].mxu0 %vm305_vm2, %v3829_v16  ;;  %6883 = vmatprep.subr.mxu0 %v7229_v2 }
 0x9d0   :  { %6885 = vmatprep.mubr.msk.f32.mxu0 %vm7230_vm1, %v7229_v2 }
 0x9d1   :  { %v4365_v26 = vpop.permute.xlu1 %4364 }
 0x9d2   :  { %6884 = vmatpush3.msra.mxu0 %v4365_v26 }
 0x9d3   :  { %6886 = vmatmul.mubr.msk.f32.vlgmr.msra.gmra.mrb[60].mxu0 %vm305_vm2, %v3831_v22  ;;  %6898 = vmatprep.subr.mxu0 %v7229_v2 }
 0x9d4   :  { %6900 = vmatprep.mubr.msk.f32.mxu0 %vm7230_vm1, %v7229_v2 }
 0x9eb   :  { %v3758_v27 = vpop.xlane.xlu0 %3757 }
 0x9ec   :  { %v3772_v28 = vsub.f32 %v7879_v51, %v3758_v27  ;;  %v4533_v51 = vpop.permute.xlu1 %4532 }
 0x9ee   :  { %v3784_v29 = vmul.f32 1.442695, %v3772_v28 }
 0x9ef   :  { %v3764_v30 = vpop.xlane.xlu0 %3763 }
 0x9f0   :  { %7167 = vpow2.f32 %v3784_v29  ;;  %v3774_v31 = vsub.f32 %v3663_v56, %v3764_v30  ;;  %v4611_v39 = vpop.permute.xlu1 %4610 }
 0x9f2   :  { %v3788_v24 = vmul.f32 1.442695, %v3774_v31 }
 0x9f3   :  { %v3794_v34 = vpop.xlane.xlu0 %3793 }
 0x9f4   :  { %7169 = vpow2.f32 %v3788_v24  ;;  %v4689_v56 = vpop.permute.xlu1 %4688 }
 0x9f5   :  { %7171 = vrcp.f32 %v3794_v34 }
 0x9f7   :  { %v3800_v36 = vpop.xlane.xlu0 %3799 }
 0x9f8   :  { %7173 = vrcp.f32 %v3800_v36 }
 0x9fa   :  { %v7168_v44 = vpop.eup %7167 }
 0x9fb   :  { %v3833_v41 = vpop.permute.xlu0 %3832  ;;  %v3804_v45 = vsel %vm305_vm2, %v7168_v44, 0.0 }
 0x9fc   :  { %3805 = vadd.xlane.f32.xlu0 %v3804_v45  ;;  %6849 = vmatpush3.msra.mxu1 %v3833_v41 }
 0x9fd   :  { %6858 = vmatprep.subr.mxu1 %v7229_v2 }
 0x9fe   :  { %v7170_v46 = vpop.eup %7169 }
 0x9ff   :  { %v7172_v47 = vpop.eup %7171  ;;  %v3810_v49 = vsel %vm305_vm2, %v7170_v46, 0.0  ;;  %v4137_v42 = vpop.permute.xlu0 %4136 }
 0xa00   :  { %v3824_v50 = vmul.f32 %v7172_v47, %v7889_v35  ;;  %3811 = vadd.xlane.f32.xlu0 %v3810_v49  ;;  %v4767_v35 = vpop.permute.xlu1 %4766 }
 0xa02   :  { %v7174_v33 = vpop.eup %7173  ;;  %6851 = vmatmul.mubr.msk.f32.vlgmr.msra.gmra.mrb[42].mxu1 %vm305_vm2, %v3824_v50 }
 0xa03   :  { %v3826_v32 = vmul.f32 %v7174_v33, %v7895_v60  ;;  %6859 = vmatpush3.msra.mxu1 %v3985_v7  ;;  %6860 = vmatprep.mubr.msk.f32.mxu1 %vm7230_vm1, %v7229_v2 }
 0xa04   :  { %6868 = vmatprep.subr.mxu1 %v7229_v2  ;;  %v4925_v6 = vpop.permute.xlu1 %4924 }
 0xa06   :  { %6861 = vmatmul.mubr.msk.f32.vlgmr.msra.gmra.mrb[44].mxu1 %vm305_vm2, %v3826_v32 }
 0xa07   :  { %6869 = vmatpush3.msra.mxu1 %v4137_v42  ;;  %6870 = vmatprep.mubr.msk.f32.mxu1 %vm7230_vm1, %v7229_v2 }
 0xa08   :  { %6878 = vmatprep.subr.mxu1 %v7229_v2  ;;  %v4923_v12 = vpop.permute.xlu1 %4922 }
 0xa0c   :  { %v5081_v20 = vpop.permute.xlu1 %5080 }
 0xa10   :  { %v5079_v27 = vpop.permute.xlu1 %5078 }
 0xa16   :  { %4288 = vrot.lane.b32.xlu0 %v7399_v17, %s7238_s4 }
 0xa1a   :  { %4534 = vrot.lane.b32.xlu0 %v7390_v11, %s7240_s26 }
 0xa1e   :  { %4612 = vrot.lane.b32.xlu0 %v7394_v15, %s7240_s26 }
 0xa22   :  { %4690 = vrot.lane.b32.xlu0 %v7388_v9, %s7240_s26 }
 0xa26   :  { %4768 = vrot.lane.b32.xlu0 %v7392_v13, %s7240_s26 }
 0xa2a   :  { %4846 = vrot.lane.b32.xlu0 %v7401_v19, %s7240_s26 }
 0xa2e   :  { %4844 = vrot.lane.b32.xlu0 %v7401_v19, %s7239_s0 }
 0xa32   :  { %5002 = vrot.lane.b32.xlu0 %v7399_v17, %s7240_s26 }
 0xa36   :  { %5000 = vrot.lane.b32.xlu0 %v7399_v17, %s7239_s0 }
 0xa89   :  { %v3806_v54 = vpop.xlane.xlu0 %3805 }
 0xa8a   :  { %7175 = vrcp.f32 %v3806_v54 }
 0xa8d   :  { %v3812_v55 = vpop.xlane.xlu0 %3811 }
 0xa8e   :  { %7177 = vrcp.f32 %v3812_v55 }
 0xa91   :  { %v4289_v58 = vpop.permute.xlu0 %4288 }
 0xa94   :  { %v7176_v43 = vpop.eup %7175 }
 0xa95   :  { %v3828_v59 = vmul.f32 %v7176_v43, %v7168_v44  ;;  %v4535_v60 = vpop.permute.xlu0 %4534 }
 0xa96   :  { %v3980_v52 = vpop.f32.mrb[54].mxu0  ;;  %6899 = vmatpush3.xpose.msk.msra.mxu0 %vm305_vm2, %v4535_v60 }
 0xa97   :  { %v6857_v0 = vpop.f32.mrb[55].mxu0  ;;  %6871 = vmatmul.mubr.msk.f32.vlgmr.msra.gmra.mrb[46].mxu1 %vm305_vm2, %v3828_v59  ;;  %6903 = vmatprep.subr.mxu0 %v7229_v2 }
 0xa98   :  { %v7178_v53 = vpop.eup %7177  ;;  %6879 = vmatpush3.msra.mxu1 %v4289_v58  ;;  %6880 = vmatprep.mubr.msk.f32.mxu1 %vm7230_vm1, %v7229_v2 }
 0xa99   :  { %v3830_v3 = vmul.f32 %v7178_v53, %v7170_v46  ;;  %6901 = vmatmul.mubr.msk.f32.vlgmr.msra.gmra.mrb[62].mxu0 %vm305_vm2, %v4533_v51  ;;  %v4613_v4 = vpop.permute.xlu0 %4612  ;;  %7046 = vmatprep.subr.msk.bf16.mxu1 %vm1631_vm3, %v52_v63 }
 0xa9a   :  { %6904 = vmatpush3.xpose.msk.msra.mxu0 %vm305_vm2, %v4613_v4  ;;  %6905 = vmatprep.mubr.msk.f32.mxu0 %vm7230_vm1, %v7229_v2 }
 0xa9b   :  { %6881 = vmatmul.mubr.msk.f32.vlgmr.msra.gmra.mrb[48].mxu1 %vm305_vm2, %v3830_v3  ;;  %6908 = vmatprep.subr.mxu0 %v7229_v2 }
 0xa9c   :  { %6889 = vmatpush3.bf16.msra.mxu1 %v4457_v5 }
 0xa9d   :  { %6906 = vmatmul.mubr.msk.f32.vlgmr.msra.gmra.mrb[64].mxu0 %vm305_vm2, %v4611_v39  ;;  %v4691_v7 = vpop.permute.xlu0 %4690  ;;  %6918 = vmatprep.subr.mxu1 %v7229_v2 }
 0xa9e   :  { %v4132_v8 = vpop.f32.mrb[56].mxu0  ;;  %6909 = vmatpush3.xpose.msk.msra.mxu0 %vm305_vm2, %v4691_v7  ;;  %6910 = vmatprep.mubr.msk.f32.mxu0 %vm7230_vm1, %v7229_v2 }
 0xa9f   :  { %v6867_v10 = vpop.f32.mrb[57].mxu0  ;;  %6913 = vmatprep.subr.mxu0 %v7229_v2 }
 0xaa1   :  { %6911 = vmatmul.mubr.msk.f32.vlgmr.msra.gmra.mrb[66].mxu0 %vm305_vm2, %v4689_v56  ;;  %v4769_v14 = vpop.permute.xlu0 %4768 }
 0xaa2   :  { %v4284_v16 = vpop.f32.mrb[58].mxu0  ;;  %6914 = vmatpush3.xpose.msk.msra.mxu0 %vm305_vm2, %v4769_v14  ;;  %6915 = vmatprep.mubr.msk.f32.mxu0 %vm7230_vm1, %v7229_v2 }
 0xaa3   :  { %v6877_v18 = vpop.f32.mrb[59].mxu0  ;;  %6923 = vmatprep.subr.mxu0 %v7229_v2 }
 0xaa5   :  { %6916 = vmatmul.mubr.msk.f32.vlgmr.msra.gmra.mrb[68].mxu0 %vm305_vm2, %v4767_v35  ;;  %v4847_v36 = vpop.permute.xlu0 %4846 }
 0xaa6   :  { %v4436_v22 = vpop.f32.mrb[60].mxu0  ;;  %6924 = vmatpush3.xpose.msk.msra.mxu0 %vm305_vm2, %v4925_v6  ;;  %6925 = vmatprep.mubr.msk.f32.mxu0 %vm7230_vm1, %v7229_v2 }
 0xaa7   :  { %v6887_v26 = vpop.f32.mrb[61].mxu0  ;;  %6933 = vmatprep.subr.mxu0 %v7229_v2 }
 0xaa9   :  { %6926 = vmatmul.mubr.msk.f32.vlgmr.msra.gmra.mrb[70].mxu0 %vm305_vm2, %v4923_v12  ;;  %v4845_v51 = vpop.permute.xlu0 %4844 }
 0xaaa   :  { %6934 = vmatpush3.xpose.msk.msra.mxu0 %vm305_vm2, %v5081_v20  ;;  %6935 = vmatprep.mubr.msk.f32.mxu0 %vm7230_vm1, %v7229_v2 }
 0xaab   :  { %6943 = vmatprep.subr.mxu0 %v7229_v2 }
 0xaad   :  { %6936 = vmatmul.mubr.msk.f32.vlgmr.msra.gmra.mrb[72].mxu0 %vm305_vm2, %v5079_v27  ;;  %v5003_v59 = vpop.permute.xlu0 %5002 }
 0xaae   :  { %6945 = vmatprep.mubr.msk.f32.mxu0 %vm7230_vm1, %v7229_v2 }
 0xab1   :  { %v5001_v3 = vpop.permute.xlu0 %5000 }
 0xad5   :  { %v3904_v28 = vpop.f32.mrb[42].mxu1 }
 0xad6   :  { %v4440_v29 = vpack.c.bf16 %v3980_v52, %v3904_v28  ;;  %v6852_v30 = vpop.f32.mrb[43].mxu1 }
 0xad8   :  { %6890 = vmatprep.mubr.msk.bf16.mxu1 %vm305_vm2, %v4440_v29 }
 0xad9   :  { %v4056_v31 = vpop.f32.mrb[44].mxu1 }
 0xada   :  { %v4441_v24 = vpack.c.bf16 %v4132_v8, %v4056_v31  ;;  %v6862_v34 = vpop.f32.mrb[45].mxu1 }
 0xadc   :  { %6891 = vmatmul.mubr.msk.bf16.vlgmr.msra.gmra.mrb[20].mxu1 %vm305_vm2, %v4441_v24 }
 0xadd   :  { %6919 = vmatpush3.xpose.msk.msra.mxu1 %vm305_vm2, %v4847_v36 }
 0xade   :  { %6928 = vmatprep.subr.mxu1 %v7229_v2 }
 0xb6a   :  { %v4208_v44 = vpop.f32.mrb[46].mxu1 }
 0xb6b   :  { %v4442_v41 = vpack.c.bf16 %v4284_v16, %v4208_v44  ;;  %v6872_v45 = vpop.f32.mrb[47].mxu1 }
 0xb6c   :  { %v4606_v46 = vpop.f32.mrb[62].mxu0 }
 0xb6d   :  { %v8006_v47 = vadd.f32 %v7814_v40, %v4606_v46  ;;  %6894 = vmatprep.mubr.msk.bf16.mxu1 %vm305_vm2, %v4442_v41  ;;  %v6902_v49 = vpop.f32.mrb[63].mxu0 }
 0xb6e   :  { %v4360_v50 = vpop.f32.mrb[48].mxu1 }
 0xb6f   :  { %v4443_v33 = vpack.c.bf16 %v4436_v22, %v4360_v50  ;;  %v6882_v32 = vpop.f32.mrb[49].mxu1  ;;  %v5156_v42 = vsel %vm305_vm2, %v8006_v47, -inf }
 0xb70   :  { %5157 = vmax.xlane.f32.xlu0 %v5156_v42  ;;  %v4684_v39 = vpop.f32.mrb[64].mxu0 }
 0xb71   :  { %v4685_v54 = vadd.f32 %v7814_v40, %v4684_v39  ;;  %6895 = vmatmul.mubr.msk.bf16.gmra.mrb[24].mxu1 %vm305_vm2, %v4443_v33  ;;  %v6907_v55 = vpop.f32.mrb[65].mxu0 }
 0xb72   :  { %6920 = vmatprep.mubr.msk.f32.mxu1 %vm7230_vm1, %v7229_v2 }
 0xb73   :  { %v5159_v56 = vsel %vm305_vm2, %v4685_v54, -inf }
 0xb74   :  { %5160 = vmax.xlane.f32.xlu1 %v5159_v56  ;;  %v4762_v58 = vpop.f32.mrb[66].mxu0 }
 0xb75   :  { %v8017_v43 = vadd.f32 %v7814_v40, %v4762_v58  ;;  %v6912_v35 = vpop.f32.mrb[67].mxu0 }
 0xb77   :  { %v5162_v60 = vsel %vm305_vm2, %v8017_v43, -inf }
 0xb78   :  { %5163 = vmax.xlane.f32.xlu0 %v5162_v60  ;;  %v4840_v52 = vpop.f32.mrb[68].mxu0 }
 0xb79   :  { %v4841_v63 = vadd.f32 %v7814_v40, %v4840_v52  ;;  %v6917_v0 = vpop.f32.mrb[69].mxu0  ;;  %6921 = vmatmul.mubr.msk.f32.vlgmr.msra.gmra.mrb[50].mxu1 %vm305_vm2, %v4845_v51 }
 0xb7a   :  { %6929 = vmatpush3.xpose.msk.msra.mxu1 %vm305_vm2, %v5003_v59  ;;  %6930 = vmatprep.mubr.msk.f32.mxu1 %vm7230_vm1, %v7229_v2 }
 0xb7b   :  { %v5165_v53 = vsel %vm305_vm2, %v4841_v63, -inf  ;;  %6938 = vmatprep.subr.mxu1 %v7229_v2 }
 0xb7c   :  { %5166 = vmax.xlane.f32.xlu0 %v5165_v53  ;;  %v4996_v4 = vpop.f32.mrb[70].mxu0 }
 0xb7d   :  { %v4997_v5 = vadd.f32 %v7814_v40, %v4996_v4  ;;  %v6927_v6 = vpop.f32.mrb[71].mxu0  ;;  %6931 = vmatmul.mubr.msk.f32.vlgmr.msra.gmra.mrb[52].mxu1 %vm305_vm2, %v5001_v3 }
 0xb7e   :  { %6940 = vmatprep.mubr.msk.f32.mxu1 %vm7230_vm1, %v7229_v2 }
 0xb7f   :  { %v5171_v7 = vsel %vm305_vm2, %v4997_v5, -inf }
 0xb80   :  { %5172 = vmax.xlane.f32.xlu1 %v5171_v7  ;;  %v5152_v8 = vpop.f32.mrb[72].mxu0 }
 0xb81   :  { %v5153_v10 = vadd.f32 %v7814_v40, %v5152_v8  ;;  %v6937_v12 = vpop.f32.mrb[73].mxu0 }
 0xb83   :  { %v5177_v14 = vsel %vm305_vm2, %v5153_v10, -inf }
 0xb84   :  { %5178 = vmax.xlane.f32.xlu1 %v5177_v14 }
 0xbfd   :  { %v5158_v16 = vpop.xlane.xlu0 %5157 }
 0xbfe   :  { %v5180_v51 = vsub.f32 %v8006_v47, %v5158_v16 }
 0xc00   :  { %v5188_v39 = vmul.f32 1.442695, %v5180_v51 }
 0xc01   :  { %v5161_v18 = vpop.xlane.xlu1 %5160 }
 0xc02   :  { %v5181_v20 = vsub.f32 %v4685_v54, %v5161_v18 }
 0xc04   :  { %v5190_v22 = vmul.f32 1.442695, %v5181_v20 }
 0xc05   :  { %v5164_v26 = vpop.xlane.xlu0 %5163 }
 0xc06   :  { %7179 = vpow2.f32 %v5190_v22  ;;  %v5182_v54 = vsub.f32 %v8017_v43, %v5164_v26 }
 0xc08   :  { %v5192_v55 = vmul.f32 1.442695, %v5182_v54  ;;  %v53_v54 = vld [vmem:[%s8275_s2 + $0xc] sm:$0xf] }
 0xc09   :  { %v5167_v27 = vpop.xlane.xlu0 %5166 }
 0xc0a   :  { %v5183_v28 = vsub.f32 %v4841_v63, %v5167_v27 }
 0xc0c   :  { %v5194_v29 = vmul.f32 1.442695, %v5183_v28 }
 0xc0d   :  { %v5173_v30 = vpop.xlane.xlu1 %5172 }
 0xc0e   :  { %7181 = vpow2.f32 %v5194_v29  ;;  %v5185_v31 = vsub.f32 %v4997_v5, %v5173_v30 }
 0xc10   :  { %v7180_v24 = vpop.eup %7179  ;;  %v5198_v34 = vmul.f32 1.442695, %v5185_v31 }
 0xc11   :  { %v5179_v36 = vpop.xlane.xlu1 %5178  ;;  %v5207_v44 = vsel %vm305_vm2, %v7180_v24, 0.0 }
 0xc12   :  { %7183 = vpow2.f32 %v5198_v34  ;;  %v5187_v41 = vsub.f32 %v5153_v10, %v5179_v36  ;;  %5208 = vadd.xlane.f32.xlu1 %v5207_v44 }
 0xc14   :  { %v5202_v45 = vmul.f32 1.442695, %v5187_v41 }
 0xc16   :  { %7185 = vpow2.f32 %v5202_v45 }
 0xc17   :  { %7187 = vpow2.f32 %v5188_v39 }
 0xc18   :  { %v7182_v46 = vpop.eup %7181  ;;  %7189 = vpow2.f32 %v5192_v55 }
 0xc19   :  { %v5213_v49 = vsel %vm305_vm2, %v7182_v46, 0.0 }
 0xc1a   :  { %5214 = vadd.xlane.f32.xlu1 %v5213_v49 }
 0xc1c   :  { %v7184_v50 = vpop.eup %7183 }
 0xc1d   :  { %v5219_v33 = vsel %vm305_vm2, %v7184_v50, 0.0 }
 0xc1e   :  { %5220 = vadd.xlane.f32.xlu1 %v5219_v33 }
 0xc20   :  { %v8038_v32 = vpop.eup %7185 }
 0xc21   :  { %v5225_v42 = vsel %vm305_vm2, %v8038_v32, 0.0 }
 0xc22   :  { %5226 = vadd.xlane.f32.xlu1 %v5225_v42 }
 0xc33   :  { %5320 = vrot.lane.b32.xlu1 %v7394_v15, %s7241_s29 }
 0xc37   :  { %5396 = vrot.lane.b32.xlu1 %v7388_v9, %s7241_s29 }
 0xc3b   :  { %5472 = vrot.lane.b32.xlu1 %v7392_v13, %s7241_s29 }
 0xc3f   :  { %5624 = vrot.lane.b32.xlu1 %v7405_v23, %s7241_s29 }
 0xc43   :  { %5776 = vrot.lane.b32.xlu1 %v7403_v21, %s7241_s29  ;;  %v8058_v21 = vpop.eup %7187 }
 0xc44   :  { %v5204_v43 = vsel %vm305_vm2, %v8058_v21, 0.0  ;;  %v8062_v59 = vpop.eup %7189 }
 0xc45   :  { %v5210_v60 = vsel %vm305_vm2, %v8062_v59, 0.0 }
 0xc4c   :  { %v4918_v15 = vpop.f32.mrb[50].mxu1 }
 0xc4d   :  { %v4919_v56 = vadd.f32 %v7814_v40, %v4918_v15  ;;  %v6922_v9 = vpop.f32.mrb[51].mxu1 }
 0xc4e   :  { %v5869_v9 = vsel %vm1631_vm3, %v53_v54, 0 }
 0xc4f   :  { %v5168_v13 = vsel %vm305_vm2, %v4919_v56, -inf }
 0xc50   :  { %5169 = vmax.xlane.f32.xlu0 %v5168_v13  ;;  %v5074_v58 = vpop.f32.mrb[52].mxu1 }
 0xc51   :  { %v5075_v23 = vadd.f32 %v7814_v40, %v5074_v58  ;;  %v6932_v47 = vpop.f32.mrb[53].mxu1 }
 0xc53   :  { %v5174_v35 = vsel %vm305_vm2, %v5075_v23, -inf }
 0xc54   :  { %5175 = vmax.xlane.f32.xlu0 %v5174_v35 }
 0xc58   :  { %5205 = vadd.xlane.f32.xlu0 %v5204_v43 }
 0xc5c   :  { %5211 = vadd.xlane.f32.xlu0 %v5210_v60 }
 0xc72   :  { %5244 = vrot.lane.b32.xlu0 %v7390_v11, %s7241_s29 }
 0xc76   :  { %5548 = vrot.lane.b32.xlu0 %v7401_v19, %s7241_s29 }
 0xc9f   :  { %v5209_v40 = vpop.xlane.xlu1 %5208 }
 0xca0   :  { %7191 = vrcp.f32 %v5209_v40 }
 0xca7   :  { %v5215_v52 = vpop.xlane.xlu1 %5214 }
 0xca8   :  { %7193 = vrcp.f32 %v5215_v52 }
 0xcaa   :  { %v7192_v53 = vpop.eup %7191 }
 0xcab   :  { %v5221_v63 = vpop.xlane.xlu1 %5220  ;;  %v5237_v3 = vmul.f32 %v7192_v53, %v7180_v24 }
 0xcac   :  { %7195 = vrcp.f32 %v5221_v63 }
 0xcaf   :  { %v5227_v0 = vpop.xlane.xlu1 %5226 }
 0xcb0   :  { %7197 = vrcp.f32 %v5227_v0 }
 0xcb2   :  { %v7194_v19 = vpop.eup %7193 }
 0xcb3   :  { %v5321_v4 = vpop.permute.xlu1 %5320  ;;  %v5239_v5 = vmul.f32 %v7194_v19, %v7182_v46  ;;  %v7228_v19 = vld [vmem:[%s8273_s3 + $0x4] ss:$0 sm:$0xff] }
 0xcb4   :  { %6944 = vmatpush3.msra.mxu0 %v5321_v4 }
 0xcb5   :  { %6946 = vmatmul.mubr.msk.f32.vlgmr.msra.gmra.mrb[74].mxu0 %vm305_vm2, %v5237_v3  ;;  %6953 = vmatprep.subr.mxu0 %v7229_v2 }
 0xcb6   :  { %6955 = vmatprep.mubr.msk.f32.mxu0 %vm7230_vm1, %v7229_v2  ;;  %v7196_v7 = vpop.eup %7195 }
 0xcb7   :  { %v5397_v11 = vpop.permute.xlu1 %5396  ;;  %v5241_v8 = vmul.f32 %v7196_v7, %v7184_v50  ;;  %v294_v7 = vadd.f32 %v7228_v19, %v7347_v37 }
 0xcba   :  { %v7198_v12 = vpop.eup %7197 }
 0xcbb   :  { %v5473_v6 = vpop.permute.xlu1 %5472  ;;  %v5243_v14 = vmul.f32 %v7198_v12, %v8038_v32  ;;  %v297_v12 = vadd.f32 %v7228_v19, %v7358_v48 }
 0xcbc   :  { %6954 = vmatpush3.msra.mxu0 %v5473_v6 }
 0xcbd   :  { %6956 = vmatmul.mubr.msk.f32.vlgmr.msra.gmra.mrb[76].mxu0 %vm305_vm2, %v5239_v5  ;;  %6963 = vmatprep.subr.mxu0 %v7229_v2  ;;  %v296_v5 = vadd.f32 %v7228_v19, %v7356_v25 }
 0xcbe   :  { %6965 = vmatprep.mubr.msk.f32.mxu0 %vm7230_vm1, %v7229_v2 }
 0xcbf   :  { %v5625_v10 = vpop.permute.xlu1 %5624 }
 0xcc0   :  { %6964 = vmatpush3.msra.mxu0 %v5625_v10 }
 0xcc1   :  { %6966 = vmatmul.mubr.msk.f32.vlgmr.msra.gmra.mrb[78].mxu0 %vm305_vm2, %v5241_v8  ;;  %6973 = vmatprep.subr.mxu0 %v7229_v2 }
 0xcc2   :  { %6975 = vmatprep.mubr.msk.f32.mxu0 %vm7230_vm1, %v7229_v2 }
 0xcc3   :  { %v5777_v16 = vpop.permute.xlu1 %5776 }
 0xcc4   :  { %6974 = vmatpush3.msra.mxu0 %v5777_v16 }
 0xcc5   :  { %6976 = vmatmul.mubr.msk.f32.vlgmr.msra.gmra.mrb[80].mxu0 %vm305_vm2, %v5243_v14 }
 0xcdd   :  { %v5170_v18 = vpop.xlane.xlu0 %5169 }
 0xcde   :  { %v5184_v20 = vsub.f32 %v4919_v56, %v5170_v18  ;;  %v295_v18 = vadd.f32 %v7228_v19, %v7349_v38 }
 0xce0   :  { %v5196_v22 = vmul.f32 1.442695, %v5184_v20 }
 0xce1   :  { %v5176_v26 = vpop.xlane.xlu0 %5175 }
 0xce2   :  { %7199 = vpow2.f32 %v5196_v22  ;;  %v5186_v27 = vsub.f32 %v5075_v23, %v5176_v26 }
 0xce4   :  { %v5200_v28 = vmul.f32 1.442695, %v5186_v27 }
 0xce5   :  { %v5206_v29 = vpop.xlane.xlu0 %5205 }
 0xce6   :  { %7201 = vpow2.f32 %v5200_v28 }
 0xce7   :  { %7203 = vrcp.f32 %v5206_v29 }
 0xce9   :  { %v5212_v30 = vpop.xlane.xlu0 %5211 }
 0xcea   :  { %7205 = vrcp.f32 %v5212_v30 }
 0xcec   :  { %v7200_v31 = vpop.eup %7199 }
 0xced   :  { %v5245_v24 = vpop.permute.xlu0 %5244  ;;  %v5216_v34 = vsel %vm305_vm2, %v7200_v31, 0.0 }
 0xcee   :  { %5217 = vadd.xlane.f32.xlu0 %v5216_v34  ;;  %6939 = vmatpush3.msra.mxu1 %v5245_v24 }
 0xcef   :  { %6948 = vmatprep.subr.mxu1 %v7229_v2 }
 0xcf0   :  { %v7202_v36 = vpop.eup %7201 }
 0xcf1   :  { %v7204_v44 = vpop.eup %7203  ;;  %v5222_v41 = vsel %vm305_vm2, %v7202_v36, 0.0  ;;  %v5549_v50 = vpop.permute.xlu0 %5548 }
 0xcf2   :  { %v5236_v45 = vmul.f32 %v7204_v44, %v8058_v21  ;;  %5223 = vadd.xlane.f32.xlu0 %v5222_v41 }
 0xcf4   :  { %v7206_v46 = vpop.eup %7205  ;;  %6941 = vmatmul.mubr.msk.f32.vlgmr.msra.gmra.mrb[54].mxu1 %vm305_vm2, %v5236_v45 }
 0xcf5   :  { %v5238_v49 = vmul.f32 %v7206_v46, %v8062_v59  ;;  %6949 = vmatpush3.msra.mxu1 %v5397_v11  ;;  %6950 = vmatprep.mubr.msk.f32.mxu1 %vm7230_vm1, %v7229_v2 }
 0xcf6   :  { %6958 = vmatprep.subr.mxu1 %v7229_v2 }
 0xcf8   :  { %6951 = vmatmul.mubr.msk.f32.vlgmr.msra.gmra.mrb[56].mxu1 %vm305_vm2, %v5238_v49 }
 0xcf9   :  { %6959 = vmatpush3.msra.mxu1 %v5549_v50  ;;  %6960 = vmatprep.mubr.msk.f32.mxu1 %vm7230_vm1, %v7229_v2 }
 0xcfa   :  { %6968 = vmatprep.subr.mxu1 %v7229_v2 }
 0xd08   :  { %5700 = vrot.lane.b32.xlu0 %v7399_v17, %s7241_s29 }
 0xd7b   :  { %v5218_v33 = vpop.xlane.xlu0 %5217 }
 0xd7c   :  { %7207 = vrcp.f32 %v5218_v33 }
 0xd7f   :  { %v5224_v32 = vpop.xlane.xlu0 %5223 }
 0xd80   :  { %7209 = vrcp.f32 %v5224_v32 }
 0xd83   :  { %v5701_v55 = vpop.permute.xlu0 %5700 }
 0xd86   :  { %v7208_v42 = vpop.eup %7207 }
 0xd87   :  { %v5240_v51 = vmul.f32 %v7208_v42, %v7200_v31 }
 0xd88   :  { %v5392_v39 = vpop.f32.mrb[74].mxu0 }
 0xd89   :  { %v6947_v15 = vpop.f32.mrb[75].mxu0  ;;  %6961 = vmatmul.mubr.msk.f32.vlgmr.msra.gmra.mrb[58].mxu1 %vm305_vm2, %v5240_v51 }
 0xd8a   :  { %v7210_v56 = vpop.eup %7209  ;;  %6969 = vmatpush3.msra.mxu1 %v5701_v55  ;;  %6970 = vmatprep.mubr.msk.f32.mxu1 %vm7230_vm1, %v7229_v2 }
 0xd8b   :  { %v5242_v17 = vmul.f32 %v7210_v56, %v7202_v36  ;;  %7047 = vmatprep.subr.msk.bf16.mxu1 %vm1631_vm3, %v53_v54 }
 0xd8d   :  { %6971 = vmatmul.mubr.msk.f32.vlgmr.msra.gmra.mrb[60].mxu1 %vm305_vm2, %v5242_v17 }
 0xd8e   :  { %6979 = vmatpush3.bf16.msra.mxu1 %v5869_v9 }
 0xd90   :  { %v5544_v13 = vpop.f32.mrb[76].mxu0 }
 0xd91   :  { %v6957_v58 = vpop.f32.mrb[77].mxu0 }
 0xd94   :  { %v5696_v23 = vpop.f32.mrb[78].mxu0 }
 0xd95   :  { %v6967_v47 = vpop.f32.mrb[79].mxu0 }
 0xd96   :  { %v7063_v47 = vld [vmem:[%s8275_s2 + $0x10] sm:$0xff]  }
 0xd97   :  { %6988 = vmatprep.subr.bf16.mxu0 %v7063_v47 }
 0xd98   :  { %v5848_v35 = vpop.f32.mrb[80].mxu0  ;;  %6989 = vmatpush3.bf16.msra.mxu0 %v7063_v47 }
 0xd99   :  { %v6977_v21 = vpop.f32.mrb[81].mxu0 }
 0xdc7   :  { %v5316_v43 = vpop.f32.mrb[54].mxu1 }
 0xdc8   :  { %v5852_v59 = vpack.c.bf16 %v5392_v39, %v5316_v43  ;;  %v6942_v60 = vpop.f32.mrb[55].mxu1 }
 0xdca   :  { %6980 = vmatprep.mubr.msk.bf16.mxu1 %vm305_vm2, %v5852_v59 }
 0xdcb   :  { %v5468_v2 = vpop.f32.mrb[56].mxu1 }
 0xdcc   :  { %v5853_v40 = vpack.c.bf16 %v5544_v13, %v5468_v2  ;;  %v6952_v52 = vpop.f32.mrb[57].mxu1 }
 0xdce   :  { %6981 = vmatmul.mubr.msk.bf16.vlgmr.msra.gmra.mrb[20].mxu1 %vm305_vm2, %v5853_v40 }
 0xe5c   :  { %v5620_v63 = vpop.f32.mrb[58].mxu1 }
 0xe5d   :  { %v5854_v0 = vpack.c.bf16 %v5696_v23, %v5620_v63  ;;  %v6962_v53 = vpop.f32.mrb[59].mxu1 }
 0xe5f   :  { %6984 = vmatprep.mubr.msk.bf16.mxu1 %vm305_vm2, %v5854_v0 }
 0xe60   :  { %v5772_v3 = vpop.f32.mrb[60].mxu1 }
 0xe61   :  { %v5855_v4 = vpack.c.bf16 %v5848_v35, %v5772_v3  ;;  %v6972_v11 = vpop.f32.mrb[61].mxu1  ;;  %v7064_v35 = vld [vmem:[%s8275_s2 + $0x18] sm:$0xff]  }
 0xe62   :  { %6990 = vmatprep.subr.bf16.mxu0 %v7064_v35 }
 0xe63   :  { %6985 = vmatmul.mubr.msk.bf16.gmra.mrb[24].mxu1 %vm305_vm2, %v5855_v4  ;;  %6991 = vmatpush3.bf16.msra.mxu0 %v7064_v35 }
 0xea1   :  { %v6982_v6 = vpop.f32.mrb[20].mxu1 }
 0xea2   :  { %v7012_v8 = vadd.f32 %v6982_v6, %v296_v5  ;;  %v5905_v10 = vpop.f32.mrb[21].mxu1 }
 0xea3   :  { %v7013_v14 = vadd.f32 %v5905_v10, %v294_v7  ;;  %v6983_v16 = vpop.f32.mrb[22].mxu1 }
 0xea4   :  { %v7014_v20 = vadd.f32 %v6983_v16, %v297_v12  ;;  %v5908_v22 = vpop.f32.mrb[23].mxu1  ;;  %v5950_v25 = vsel %vm62_vm0, %v7012_v8, 0.0 }
 0xea5   :  { %v7015_v26 = vadd.f32 %v5908_v22, %v295_v18  ;;  %v5944_v27 = vsel %vm62_vm0, %v7013_v14, 0.0 }
 0xea6   :  { %5945 = vadd.xlane.f32.xlu0 %v5944_v27  ;;  %v5953_v37 = vsel %vm62_vm0, %v7014_v20, 0.0 }
 0xea7   :  { %v5947_v28 = vsel %vm62_vm0, %v7015_v26, 0.0 }
 0xea8   :  { %5948 = vadd.xlane.f32.xlu1 %v5947_v28 }
 0xeaa   :  { %5951 = vadd.xlane.f32.xlu0 %v5950_v25 }
 0xeae   :  { %5954 = vadd.xlane.f32.xlu0 %v5953_v37 }
 0xf33   :  { %v5946_v48 = vpop.xlane.xlu0 %5945 }
 0xf34   :  { %v5968_v30 = vmul.f32 0.03125, %v5946_v48 }
 0xf35   :  { %v5949_v29 = vpop.xlane.xlu1 %5948 }
 0xf36   :  { %v6986_v31 = vpop.f32.mrb[24].mxu1  ;;  %v5969_v36 = vmul.f32 0.03125, %v5949_v29  ;;  %v8126_v49 = vsub.f32 %v7013_v14, %v5968_v30 }
 0xf37   :  { %v5952_v38 = vpop.xlane.xlu0 %5951  ;;  %v7016_v24 = vadd.f32 %v6986_v31, %v7373_v62  ;;  %v5921_v34 = vpop.f32.mrb[25].mxu1  ;;  %v6415_v31 = vld [vmem:[%s8273_s3 + $0x2] ss:$0 sm:$0xff] }
 0xf38   :  { %v7017_v44 = vadd.f32 %v5921_v34, %v7367_v57  ;;  %v6987_v41 = vpop.f32.mrb[26].mxu1  ;;  %v5970_v50 = vmul.f32 0.03125, %v5952_v38  ;;  %v8130_v51 = vsub.f32 %v7015_v26, %v5969_v36  ;;  %v5984_v54 = vmul.f32 %v8126_v49, %v8126_v49 }
 0xf39   :  { %v7018_v45 = vadd.f32 %v6987_v41, %v7376_v1  ;;  %v5924_v46 = vpop.f32.mrb[27].mxu1  ;;  %v5962_v1 = vsel %vm62_vm0, %v7016_v24, 0.0  ;;  %v6416_v41 = vld [vmem:[%s8273_s3 + $0x3] ss:$0 sm:$0xff] }
 0xf3a   :  { %v7019_v33 = vadd.f32 %v5924_v46, %v7371_v61  ;;  %v5956_v32 = vsel %vm62_vm0, %v7017_v44, 0.0  ;;  %v8133_v57 = vsub.f32 %v7012_v8, %v5970_v50  ;;  %v5985_v15 = vmul.f32 %v8130_v51, %v8130_v51 }
 0xf3b   :  { %v5955_v42 = vpop.xlane.xlu0 %5954  ;;  %5957 = vadd.xlane.f32.xlu0 %v5956_v32  ;;  %v5965_v61 = vsel %vm62_vm0, %v7018_v45, 0.0  ;;  %v5992_v56 = vsel %vm62_vm0, %v5984_v54, 0.0  ;;  %v7065_v54 = vld [vmem:[%s8275_s2 + $0x20] sm:$0xff]  }
 0xf3c   :  { %v5971_v62 = vmul.f32 0.03125, %v5955_v42  ;;  %v5959_v39 = vsel %vm62_vm0, %v7019_v33, 0.0  ;;  %v5986_v17 = vmul.f32 %v8133_v57, %v8133_v57  ;;  %v5995_v9 = vsel %vm62_vm0, %v5985_v15, 0.0  ;;  %7000 = vmatprep.subr.bf16.mxu1 %v7065_v54 }
 0xf3d   :  { %5960 = vadd.xlane.f32.xlu1 %v5959_v39  ;;  %7001 = vmatpush3.bf16.msra.mxu1 %v7065_v54 }
 0xf3e   :  { %v8138_v55 = vsub.f32 %v7014_v20, %v5971_v62  ;;  %v5998_v58 = vsel %vm62_vm0, %v5986_v17, 0.0 }
 0xf3f   :  { %5963 = vadd.xlane.f32.xlu0 %v5962_v1 }
 0xf40   :  { %v5987_v13 = vmul.f32 %v8138_v55, %v8138_v55 }
 0xf41   :  { %5966 = vadd.xlane.f32.xlu1 %v5965_v61 }
 0xf42   :  { %v6001_v23 = vsel %vm62_vm0, %v5987_v13, 0.0 }
 0xf43   :  { %5993 = vadd.xlane.f32.xlu0 %v5992_v56 }
 0xf45   :  { %5996 = vadd.xlane.f32.xlu1 %v5995_v9 }
 0xf47   :  { %5999 = vadd.xlane.f32.xlu0 %v5998_v58 }
 0xf49   :  { %6002 = vadd.xlane.f32.xlu1 %v6001_v23 }
 0xfc8   :  { %v5958_v21 = vpop.xlane.xlu0 %5957 }
 0xfc9   :  { %v5972_v43 = vmul.f32 0.03125, %v5958_v21 }
 0xfca   :  { %v5961_v59 = vpop.xlane.xlu1 %5960 }
 0xfcb   :  { %v8157_v60 = vsub.f32 %v7017_v44, %v5972_v43  ;;  %v5973_v2 = vmul.f32 0.03125, %v5961_v59 }
 0xfcc   :  { %v5964_v40 = vpop.xlane.xlu0 %5963 }
 0xfcd   :  { %v8159_v52 = vsub.f32 %v7019_v33, %v5973_v2  ;;  %v5974_v63 = vmul.f32 0.03125, %v5964_v40  ;;  %v5988_v0 = vmul.f32 %v8157_v60, %v8157_v60 }
 0xfce   :  { %v5967_v53 = vpop.xlane.xlu1 %5966 }
 0xfcf   :  { %v8163_v3 = vsub.f32 %v7016_v24, %v5974_v63  ;;  %v5975_v4 = vmul.f32 0.03125, %v5967_v53  ;;  %v6004_v11 = vsel %vm62_vm0, %v5988_v0, 0.0  ;;  %v5989_v19 = vmul.f32 %v8159_v52, %v8159_v52 }
 0xfd0   :  { %6005 = vadd.xlane.f32.xlu0 %v6004_v11  ;;  %v5994_v5 = vpop.xlane.xlu0 %5993 }
 0xfd1   :  { %v8168_v6 = vsub.f32 %v7018_v45, %v5975_v4  ;;  %v6016_v7 = vmul.f32 0.03125, %v5994_v5  ;;  %v6007_v8 = vsel %vm62_vm0, %v5989_v19, 0.0  ;;  %v5990_v10 = vmul.f32 %v8163_v3, %v8163_v3 }
 0xfd2   :  { %6008 = vadd.xlane.f32.xlu1 %v6007_v8  ;;  %v5997_v12 = vpop.xlane.xlu1 %5996 }
 0xfd3   :  { %v6024_v14 = vadd.f32 1e-05, %v6016_v7  ;;  %v6017_v16 = vmul.f32 0.03125, %v5997_v12  ;;  %v6010_v18 = vsel %vm62_vm0, %v5990_v10, 0.0  ;;  %v5991_v20 = vmul.f32 %v8168_v6, %v8168_v6 }
 0xfd4   :  { %6011 = vadd.xlane.f32.xlu0 %v6010_v18  ;;  %v6000_v22 = vpop.xlane.xlu0 %5999 }
 0xfd5   :  { %7211 = vrsqrt.f32 %v6024_v14  ;;  %v6025_v26 = vadd.f32 1e-05, %v6017_v16  ;;  %v6018_v27 = vmul.f32 0.03125, %v6000_v22  ;;  %v6013_v28 = vsel %vm62_vm0, %v5991_v20, 0.0 }
 0xfd6   :  { %6014 = vadd.xlane.f32.xlu1 %v6013_v28  ;;  %v6003_v25 = vpop.xlane.xlu1 %6002 }
 0xfd7   :  { %7213 = vrsqrt.f32 %v6025_v26  ;;  %v6026_v37 = vadd.f32 1e-05, %v6018_v27  ;;  %v6019_v48 = vmul.f32 0.03125, %v6003_v25 }
 0xfd9   :  { %7215 = vrsqrt.f32 %v6026_v37  ;;  %v6027_v29 = vadd.f32 1e-05, %v6019_v48 }
 0xfdb   :  { %7217 = vrsqrt.f32 %v6027_v29 }
 0xfdf   :  { %v7212_v30 = vpop.eup %7211 }
 0xfe0   :  { %v6040_v38 = vmul.f32 %v7212_v30, %v8126_v49 }
 0xfe1   :  { %v7214_v24 = vpop.eup %7213 }
 0xfe2   :  { %v6041_v34 = vmul.f32 %v7214_v24, %v8130_v51  ;;  %v6052_v36 = vmul.f32 %v6415_v31, %v6040_v38 }
 0xfe3   :  { %v7216_v44 = vpop.eup %7215 }
 0xfe4   :  { %v6042_v45 = vmul.f32 %v7216_v44, %v8133_v57  ;;  %v6053_v46 = vmul.f32 %v6415_v31, %v6041_v34  ;;  %v8187_v42 = vadd.f32 %v6416_v41, %v6052_v36 }
 0xfe5   :  { %v7218_v50 = vpop.eup %7217 }
 0xfe6   :  { %v6054_v33 = vmul.f32 %v6415_v31, %v6042_v45  ;;  %v6043_v32 = vmul.f32 %v7218_v50, %v8138_v55  ;;  %v8189_v62 = vadd.f32 %v6416_v41, %v6053_v46  ;;  %v7066_v55 = vld [vmem:[%s8275_s2 + $0x28] sm:$0xff]  }
 0xfe7   :  { %7002 = vmatprep.subr.bf16.mxu1 %v7066_v55 }
 0xfe8   :  { %v6055_v49 = vmul.f32 %v6415_v31, %v6043_v32  ;;  %v6072_v51 = vpack.c.bf16 %v8189_v62, %v8187_v42  ;;  %v8194_v39 = vadd.f32 %v6416_v41, %v6054_v33  ;;  %7003 = vmatpush3.bf16.msra.mxu1 %v7066_v55  ;;  %v6424_v55 = vld [vmem:[%s8273_s3 + $0x6] ss:$0 sm:$0xff] }
 0xfea   :  { %6992 = vmatprep.mubr.msk.bf16.mxu0 %vm62_vm0, %v6072_v51  ;;  %v8196_v1 = vadd.f32 %v6416_v41, %v6055_v49 }
 0xfec   :  { %v6073_v57 = vpack.c.bf16 %v8196_v1, %v8194_v39 }
 0xfee   :  { %6993 = vmatmul.mubr.msk.bf16.vlgmr.msra.gmra.mrb[84].mxu0 %vm62_vm0, %v6073_v57 }
0x105d   :  { %v6006_v61 = vpop.xlane.xlu0 %6005 }
0x105e   :  { %v6020_v15 = vmul.f32 0.03125, %v6006_v61 }
0x105f   :  { %v6009_v56 = vpop.xlane.xlu1 %6008 }
0x1060   :  { %v6028_v17 = vadd.f32 1e-05, %v6020_v15  ;;  %v6021_v9 = vmul.f32 0.03125, %v6009_v56 }
0x1061   :  { %v6012_v13 = vpop.xlane.xlu0 %6011 }
0x1062   :  { %7219 = vrsqrt.f32 %v6028_v17  ;;  %v6029_v58 = vadd.f32 1e-05, %v6021_v9  ;;  %v6022_v23 = vmul.f32 0.03125, %v6012_v13 }
0x1063   :  { %v6015_v47 = vpop.xlane.xlu1 %6014 }
0x1064   :  { %7221 = vrsqrt.f32 %v6029_v58  ;;  %v6030_v35 = vadd.f32 1e-05, %v6022_v23  ;;  %v6023_v21 = vmul.f32 0.03125, %v6015_v47 }
0x1066   :  { %7223 = vrsqrt.f32 %v6030_v35  ;;  %v6031_v43 = vadd.f32 1e-05, %v6023_v21 }
0x1068   :  { %7225 = vrsqrt.f32 %v6031_v43 }
0x106c   :  { %v7220_v59 = vpop.eup %7219 }
0x106d   :  { %v6044_v2 = vmul.f32 %v7220_v59, %v8157_v60 }
0x106e   :  { %v7222_v40 = vpop.eup %7221 }
0x106f   :  { %v6045_v63 = vmul.f32 %v7222_v40, %v8159_v52  ;;  %v6056_v0 = vmul.f32 %v6415_v31, %v6044_v2 }
0x1070   :  { %v7224_v53 = vpop.eup %7223 }
0x1071   :  { %v6046_v4 = vmul.f32 %v7224_v53, %v8163_v3  ;;  %v6057_v11 = vmul.f32 %v6415_v31, %v6045_v63  ;;  %v8211_v7 = vadd.f32 %v6416_v41, %v6056_v0 }
0x1072   :  { %v7226_v19 = vpop.eup %7225 }
0x1073   :  { %v6047_v5 = vmul.f32 %v7226_v19, %v8168_v6  ;;  %v8213_v8 = vadd.f32 %v6416_v41, %v6057_v11  ;;  %v6058_v10 = vmul.f32 %v6415_v31, %v6046_v4  ;;  %v6417_v6 = vld [vmem:[%s8273_s3 + $0x5] ss:$0 sm:$0xff] }
0x1075   :  { %v6074_v12 = vpack.c.bf16 %v8213_v8, %v8211_v7  ;;  %v6059_v60 = vmul.f32 %v6415_v31, %v6047_v5  ;;  %v6070_v52 = vadd.f32 %v6416_v41, %v6058_v10 }
0x1077   :  { %6996 = vmatprep.mubr.msk.bf16.mxu0 %vm62_vm0, %v6074_v12  ;;  %v8218_v14 = vadd.f32 %v6416_v41, %v6059_v60 }
0x1079   :  { %v6075_v3 = vpack.c.bf16 %v8218_v14, %v6070_v52 }
0x107b   :  { %6997 = vmatmul.mubr.msk.bf16.gmra.mrb[88].mxu0 %vm62_vm0, %v6075_v3 }
0x10c1   :  { %v6994_v16 = vpop.f32.mrb[84].mxu0 }
0x10c2   :  { %v6147_v18 = vadd.f32 %v6994_v16, %v6417_v6  ;;  %v6138_v20 = vpop.f32.mrb[85].mxu0 }
0x10c3   :  { %v6139_v22 = vadd.f32 %v6417_v6, %v6138_v20  ;;  %v6995_v26 = vpop.f32.mrb[86].mxu0 }
0x10c4   :  { %v6150_v27 = vadd.f32 %v6995_v26, %v6417_v6  ;;  %v6141_v28 = vpop.f32.mrb[87].mxu0  ;;  %v6171_v37 = vmax.f32 %v6147_v18, 0.0 }
0x10c5   :  { %v6142_v25 = vadd.f32 %v6417_v6, %v6141_v28  ;;  %v6169_v29 = vmax.f32 %v6139_v22, 0.0 }
0x10c6   :  { %v6172_v48 = vmax.f32 %v6150_v27, 0.0 }
0x10c7   :  { %v6170_v30 = vmax.f32 %v6142_v25, 0.0 }
0x10c8   :  { %v6178_v31 = vpack.c.bf16 %v6172_v48, %v6171_v37 }
0x10c9   :  { %v6177_v38 = vpack.c.bf16 %v6170_v30, %v6169_v29 }
0x10cb   :  { %7004 = vmatprep.mubr.msk.bf16.mxu1 %vm62_vm0, %v6177_v38 }
0x10cc   :  { %7005 = vmatmul.mubr.msk.bf16.vlgmr.msra.gmra.mrb[64].mxu1 %vm62_vm0, %v6178_v31 }
0x114e   :  { %v6998_v24 = vpop.f32.mrb[88].mxu0 }
0x114f   :  { %v6163_v34 = vadd.f32 %v6998_v24, %v6417_v6  ;;  %v6154_v36 = vpop.f32.mrb[89].mxu0 }
0x1150   :  { %v6155_v44 = vadd.f32 %v6417_v6, %v6154_v36  ;;  %v6999_v41 = vpop.f32.mrb[90].mxu0 }
0x1151   :  { %v6166_v45 = vadd.f32 %v6999_v41, %v6417_v6  ;;  %v6157_v46 = vpop.f32.mrb[91].mxu0  ;;  %v6175_v33 = vmax.f32 %v6163_v34, 0.0 }
0x1152   :  { %v6158_v50 = vadd.f32 %v6417_v6, %v6157_v46  ;;  %v6173_v49 = vmax.f32 %v6155_v44, 0.0 }
0x1153   :  { %v6176_v32 = vmax.f32 %v6166_v45, 0.0 }
0x1154   :  { %v6174_v51 = vmax.f32 %v6158_v50, 0.0 }
0x1155   :  { %v6180_v57 = vpack.c.bf16 %v6176_v32, %v6175_v33 }
0x1156   :  { %v6179_v54 = vpack.c.bf16 %v6174_v51, %v6173_v49 }
0x1158   :  { %7008 = vmatprep.mubr.msk.bf16.mxu1 %vm62_vm0, %v6179_v54 }
0x1159   :  { %7009 = vmatmul.mubr.msk.bf16.gmra.mrb[68].mxu1 %vm62_vm0, %v6180_v57 }
0x119f   :  { %v7006_v61 = vpop.f32.mrb[64].mxu1 }
0x11a0   :  { %v6252_v15 = vadd.f32 %v7006_v61, %v6424_v55  ;;  %v6243_v56 = vpop.f32.mrb[65].mxu1 }
0x11a1   :  { %v6244_v17 = vadd.f32 %v6424_v55, %v6243_v56  ;;  %v7007_v9 = vpop.f32.mrb[66].mxu1 }
0x11a2   :  { %v6276_v13 = vadd.f32 %v6252_v15, %v8194_v39  ;;  %v6255_v58 = vadd.f32 %v7007_v9, %v6424_v55  ;;  %v6246_v23 = vpop.f32.mrb[67].mxu1 }
0x11a3   :  { %v6274_v47 = vadd.f32 %v6244_v17, %v8187_v42  ;;  %v6247_v35 = vadd.f32 %v6424_v55, %v6246_v23 }
0x11a4   :  { %6284 = vst.msk [vmem:[%s8276_s5 + $0x10] sm:$0xff] %vm62_vm0, %v6276_v13  ;;  %v6277_v21 = vadd.f32 %v6255_v58, %v8196_v1 }
0x11a5   :  { %6282 = vst.msk [vmem:[%s8276_s5] sm:$0xff] %vm62_vm0, %v6274_v47  ;;  %v6275_v43 = vadd.f32 %v6247_v35, %v8189_v62 }
0x11a6   :  { %6285 = vst.msk [vmem:[%s8276_s5 + $0x18] sm:$0xff] %vm62_vm0, %v6277_v21 }
0x11a7   :  { %6283 = vst.msk [vmem:[%s8276_s5 + $0x8] sm:$0xff] %vm62_vm0, %v6275_v43 }
0x122c   :  { %v7010_v42 = vpop.f32.mrb[68].mxu1 }
0x122d   :  { %v6268_v39 = vadd.f32 %v7010_v42, %v6424_v55  ;;  %v6259_v1 = vpop.f32.mrb[69].mxu1 }
0x122e   :  { %v6260_v59 = vadd.f32 %v6424_v55, %v6259_v1  ;;  %v7011_v2 = vpop.f32.mrb[70].mxu1 }
0x122f   :  { %v6280_v40 = vadd.f32 %v6268_v39, %v6070_v52  ;;  %v6271_v63 = vadd.f32 %v7011_v2, %v6424_v55  ;;  %v6262_v0 = vpop.f32.mrb[71].mxu1 }
0x1230   :  { %v6278_v62 = vadd.f32 %v6260_v59, %v8211_v7  ;;  %v6263_v53 = vadd.f32 %v6424_v55, %v6262_v0 }
0x1231   :  { %6288 = vst.msk [vmem:[%s8276_s5 + $0x30] sm:$0xff] %vm62_vm0, %v6280_v40  ;;  %v6281_v4 = vadd.f32 %v6271_v63, %v8218_v14 }
0x1232   :  { %6286 = vst.msk [vmem:[%s8276_s5 + $0x20] sm:$0xff] %vm62_vm0, %v6278_v62  ;;  %v6279_v11 = vadd.f32 %v6263_v53, %v8213_v8 }
0x1233   :  { %6289 = vst.msk [vmem:[%s8276_s5 + $0x38] sm:$0xff] %vm62_vm0, %v6281_v4 }
0x1234   :  { %6287 = vst.msk [vmem:[%s8276_s5 + $0x28] sm:$0xff] %vm62_vm0, %v6279_v11 }

</bundles_post_ra>
